<compile_context>
chip_gen: v7x
topology: tpu7x:2x2x1
jax: 0.10.0
libtpu: 0.0.40
codegen_flags: <defaults>
</compile_context>

<pallas_src>
import functools

import jax
import jax.numpy as jnp
from jax import lax
from jax.experimental import pallas as pl
from jax.experimental.pallas import tpu as pltpu

LANE = 128  # TPU lane width (last-dim tiling unit)


def _round_up(x, m):
    return ((x + m - 1) // m) * m


def _row_tile(np_rows):
    # np_rows is a multiple of 128. Prefer 256-wide row tiles (MXU-sized on
    # v6e/v7x) while keeping >= 2 parallel row tiles whenever possible so v7x's
    # second TensorCore is used.
    if np_rows % 256 == 0 and np_rows >= 512:
        return 256
    return min(np_rows, 128)


def _pad2d(x, rows, cols):
    pr, pc = rows - x.shape[0], cols - x.shape[1]
    if pr or pc:
        x = jnp.pad(x, ((0, pr), (0, pc)))
    return x


# ----------------------------------------------------------------------------
# Kernel 1: similarity graph  S = relu(X @ X^T)   (no transpose materialized)
# ----------------------------------------------------------------------------
def _similarity_kernel(xl_ref, xr_ref, o_ref, *, apply_relu):
    # Contract the shared feature dim of both operands: S_tile = Xl @ Xr^T.
    s = lax.dot_general(
        xl_ref[...], xr_ref[...],
        dimension_numbers=(((1,), (1,)), ((), ())),
        preferred_element_type=jnp.float32)
    if apply_relu:
        s = jnp.maximum(s, 0.0)   # fused on the f32 result; free VPU filler
    o_ref[...] = s


def similarity_relu(x_p, *, tm):
    """x_p: (Np, Kp) bf16, row-padded/lane-dense.  Returns relu(x_p @ x_p^T) f32."""
    Np, Kp = x_p.shape
    assert Np % tm == 0 and Kp % LANE == 0
    n_tiles = Np // tm

    flops = 2 * Np * Np * Kp
    bytes_accessed = 2 * n_tiles * x_p.size * 2 + Np * Np * 4

    kernel = functools.partial(_similarity_kernel, apply_relu=True)
    return pl.pallas_call(
        kernel,
        out_shape=jax.ShapeDtypeStruct((Np, Np), jnp.float32),
        grid_spec=pltpu.PrefetchScalarGridSpec(
            num_scalar_prefetch=0,
            grid=(n_tiles, n_tiles),
            in_specs=[
                pl.BlockSpec((tm, Kp), lambda i, j: (i, 0)),  # rows of X
                pl.BlockSpec((tm, Kp), lambda i, j: (j, 0)),  # cols of S = rows of X
            ],
            out_specs=pl.BlockSpec((tm, tm), lambda i, j: (i, j)),
        ),
        compiler_params=pltpu.CompilerParams(
            dimension_semantics=("parallel", "parallel")),
        cost_estimate=pl.CostEstimate(
            flops=flops, transcendentals=0, bytes_accessed=bytes_accessed),
    )(x_p, x_p)


# ----------------------------------------------------------------------------
# Kernel 2: fused GCN layer  Y = act((A @ X) @ W), full-N contraction per tile
# ----------------------------------------------------------------------------
def _gcn_layer_kernel(a_ref, x_ref, w_ref, o_ref, *, apply_relu):
    # Aggregation over ALL nodes in one tile (no K axis / accumulator scratch),
    # then the linear projection + optional ReLU fused into the same step.
    h = jnp.dot(a_ref[...], x_ref[...], preferred_element_type=jnp.float32)
    y = jnp.dot(h.astype(w_ref.dtype), w_ref[...],
                preferred_element_type=jnp.float32)
    if apply_relu:
        y = jnp.maximum(y, 0.0)
    o_ref[...] = y.astype(o_ref.dtype)


def gcn_layer_padded(a_p, x_p, w_p, *, relu, out_dtype, tm):
    """a_p: (Np, Np) bf16, x_p: (Np, Dip) bf16, w_p: (Dip, Dop) bf16 (all padded).
    Returns the padded (Np, Dop) output in `out_dtype`."""
    Np, Nk = a_p.shape
    Nk2, Dip = x_p.shape
    Dip2, Dop = w_p.shape
    assert Nk == Nk2 and Dip == Dip2 and Np % tm == 0

    n_row_tiles = Np // tm
    flops = 2 * Np * Nk * Dip + 2 * Np * Dip * Dop
    bytes_accessed = (a_p.size * 2
                      + n_row_tiles * (x_p.size * 2 + w_p.size * 2)
                      + Np * Dop * jnp.dtype(out_dtype).itemsize)

    kernel = functools.partial(_gcn_layer_kernel, apply_relu=relu)
    return pl.pallas_call(
        kernel,
        out_shape=jax.ShapeDtypeStruct((Np, Dop), out_dtype),
        grid_spec=pltpu.PrefetchScalarGridSpec(
            num_scalar_prefetch=0,
            grid=(n_row_tiles,),
            in_specs=[
                pl.BlockSpec((tm, Nk), lambda i: (i, 0)),    # A row tile
                pl.BlockSpec((Nk, Dip), lambda i: (0, 0)),   # X (resident)
                pl.BlockSpec((Dip, Dop), lambda i: (0, 0)),  # W (resident)
            ],
            out_specs=pl.BlockSpec((tm, Dop), lambda i: (i, 0)),
        ),
        compiler_params=pltpu.CompilerParams(
            dimension_semantics=("parallel",)),
        cost_estimate=pl.CostEstimate(
            flops=flops, transcendentals=0, bytes_accessed=bytes_accessed),
    )(a_p, x_p, w_p)


# ----------------------------------------------------------------------------
# GCN_E forward pass
# ----------------------------------------------------------------------------
def cal_edge_emb(X):
    # TODO(synk): the original cal_edge_emb is not given in the spec; we use L2
    # row-normalization of the node features as the embedding.
    norm = jnp.sqrt(jnp.sum(X * X, axis=-1, keepdims=True))
    return X / jnp.maximum(norm, 1e-12)


def graph_norm(A, self_loop=True, symmetric=True):
    if self_loop:
        A = A + jnp.eye(A.shape[0], dtype=A.dtype)
    d = jnp.sum(A, axis=-1)
    if symmetric:
        d_inv_sqrt = 1.0 / jnp.sqrt(jnp.maximum(d, 1e-12))
        return A * d_inv_sqrt[:, None] * d_inv_sqrt[None, :]
    d_inv = 1.0 / jnp.maximum(d, 1e-12)
    return A * d_inv[:, None]


@jax.jit
def gcn_e_forward(X, params):
    """Pallas implementation of GCN_E.forward(X)."""
    W1, W2, W3 = params
    N, Din = X.shape
    out_dim = W3.shape[1]

    Np = _round_up(N, LANE)
    tm = _row_tile(Np)

    # Edge embedding, cast + pad ONCE; reused by the similarity kernel and layer 1.
    Xe = cal_edge_emb(X)
    xe_p = _pad2d(Xe.astype(jnp.bfloat16), Np, _round_up(Din, LANE))

    # TODO(synk): original cal_similarity not given; cosine-similarity graph
    # clamped at 0 (Xe is row-normalized), computed on the MXU with fused ReLU.
    S = similarity_relu(xe_p, tm=tm)
    A = graph_norm(S[:N, :N], self_loop=True, symmetric=True)

    # Normalized adjacency cast + padded once, reused for all three layers.
    a_p = _pad2d(A.astype(jnp.bfloat16), Np, Np)

    def pad_w(W):
        di, do = W.shape
        return _pad2d(W.astype(jnp.bfloat16),
                      _round_up(di, LANE), _round_up(do, LANE))

    w1_p, w2_p, w3_p = pad_w(W1), pad_w(W2), pad_w(W3)

    # TODO(synk): all three layers could be fused into one pallas_call (A + H
    # resident in VMEM), but that forfeits the 2-row-tile parallelism on v7x.
    h1_p = gcn_layer_padded(a_p, xe_p, w1_p, relu=True,
                            out_dtype=jnp.bfloat16, tm=tm)   # relu(W1(A @ X))
    h2_p = gcn_layer_padded(a_p, h1_p, w2_p, relu=True,
                            out_dtype=jnp.bfloat16, tm=tm)   # relu(W2(A @ H))
    y_p = gcn_layer_padded(a_p, h2_p, w3_p, relu=False,
                           out_dtype=jnp.float32, tm=tm)     # W3(A @ H)

    return y_p[:N, :out_dim]


# ----------------------------------------------------------------------------
# Reference (pure jnp, mirrors the bf16 casts used by the kernels)
# ----------------------------------------------------------------------------
def _bf16_dot(a, b):
    return jnp.dot(a.astype(jnp.bfloat16), b.astype(jnp.bfloat16),
                   preferred_element_type=jnp.float32)


def _ref_layer(A, X, W, relu):
    H = _bf16_dot(A, X)
    Y = _bf16_dot(H, W)
    return jnp.maximum(Y, 0.0) if relu else Y


def gcn_e_reference(X, params):
    W1, W2, W3 = params
    Xe = cal_edge_emb(X)
    A = jnp.maximum(_bf16_dot(Xe, Xe.T), 0.0)
    A = graph_norm(A, self_loop=True, symmetric=True)
    H = _ref_layer(A, Xe, W1, True)
    H = _ref_layer(A, H, W2, True)
    return _ref_layer(A, H, W3, False)


if __name__ == "__main__":
    key = jax.random.PRNGKey(0)
    kx, k1, k2, k3 = jax.random.split(key, 4)

    # Small graph: 512 nodes, 64-d input features, 32-d output.
    N, in_dim, out_dim = 512, 64, 32
    h1, h2 = in_dim // 2, in_dim // 4

    X = jax.random.normal(kx, (N, in_dim), dtype=jnp.float32)

    def init_w(k, fan_in, fan_out):
        # nn.Linear(fan_in, fan_out, bias=False) weights, stored as (in, out).
        bound = float(1.0 / (fan_in ** 0.5))
        return jax.random.uniform(k, (fan_in, fan_out), jnp.float32, -bound, bound)

    params = (init_w(k1, in_dim, h1), init_w(k2, h1, h2), init_w(k3, h2, out_dim))

    out = jax.block_until_ready(gcn_e_forward(X, params))
    ref = gcn_e_reference(X, params)

    assert out.shape == (N, out_dim)
    assert bool(jnp.all(jnp.isfinite(out)))
    max_err = float(jnp.max(jnp.abs(out - ref)))
    assert jnp.allclose(out, ref, atol=2e-2, rtol=2e-2), f"max_err={max_err}"

    print("KERNEL_OK")
</pallas_src>

<mosaic_0001>
module attributes {stable_mosaic.version = 11 : i64} {
  func.func @_similarity_kernel(%arg0: i32, %arg1: i32, %arg2: memref<256x128xbf16, #tpu.memory_space<vmem>>, %arg3: memref<256x128xbf16, #tpu.memory_space<vmem>>, %arg4: memref<256x256xf32, #tpu.memory_space<vmem>>) attributes {dimension_semantics = [#tpu.dimension_semantics<parallel>, #tpu.dimension_semantics<parallel>], iteration_bounds = array<i64: 2, 2>, scalar_prefetch = 0 : i64, scratch_operands = 0 : i64, tpu.core_type = #tpu.core_type<tc>, window_params = [{transform_indices = @transform_0, window_bounds = array<i64: 256, 128>}, {transform_indices = @transform_1, window_bounds = array<i64: 256, 128>}, {transform_indices = @transform_2, window_bounds = array<i64: 256, 256>}]} {
    %c0 = arith.constant 0 : index
    %c0_0 = arith.constant 0 : index
    %0 = vector.load %arg2[%c0, %c0_0] : memref<256x128xbf16, #tpu.memory_space<vmem>>, vector<256x128xbf16>
    %c0_1 = arith.constant 0 : index
    %c0_2 = arith.constant 0 : index
    %1 = vector.load %arg3[%c0_1, %c0_2] : memref<256x128xbf16, #tpu.memory_space<vmem>>, vector<256x128xbf16>
    %cst = arith.constant dense<0.000000e+00> : vector<256x256xf32>
    %2 = tpu.matmul %0, %1, %cst {dimension_numbers = #tpu.dot_dimension_numbers<[1], [1], [0], [0], [0, 0, 1, 0], [], []>} : vector<256x128xbf16>, vector<256x128xbf16>, vector<256x256xf32> -> vector<256x256xf32>
    %cst_3 = arith.constant 0.000000e+00 : f32
    %3 = vector.broadcast %cst_3 : f32 to vector<256x256xf32>
    %4 = arith.maximumf %2, %3 : vector<256x256xf32>
    %c0_4 = arith.constant 0 : index
    %c0_5 = arith.constant 0 : index
    %5 = vector.load %arg4[%c0_4, %c0_5] : memref<256x256xf32, #tpu.memory_space<vmem>>, vector<256x256xf32>
    tpu.vector_store %arg4[%c0_4, %c0_5], %4 {strides = array<i32>} : memref<256x256xf32, #tpu.memory_space<vmem>>, vector<256x256xf32>,
    return
  }
  func.func @transform_0(%arg0: i32, %arg1: i32) -> (i32, i32) {
    %c0_i32 = arith.constant 0 : i32
    %c0_i32_0 = arith.constant 0 : i32
    return %arg0, %c0_i32 : i32, i32
  }
  func.func @transform_1(%arg0: i32, %arg1: i32) -> (i32, i32) {
    %c0_i32 = arith.constant 0 : i32
    %c0_i32_0 = arith.constant 0 : i32
    return %arg1, %c0_i32 : i32, i32
  }
  func.func @transform_2(%arg0: i32, %arg1: i32) -> (i32, i32) {
    %c0_i32 = arith.constant 0 : i32
    return %arg0, %arg1 : i32, i32
  }
}

module attributes {stable_mosaic.version = 11 : i64} {
  func.func @_gcn_layer_kernel(%arg0: i32, %arg1: memref<256x512xbf16, #tpu.memory_space<vmem>>, %arg2: memref<512x128xbf16, #tpu.memory_space<vmem>>, %arg3: memref<128x128xbf16, #tpu.memory_space<vmem>>, %arg4: memref<256x128xbf16, #tpu.memory_space<vmem>>) attributes {dimension_semantics = [#tpu.dimension_semantics<parallel>], iteration_bounds = array<i64: 2>, scalar_prefetch = 0 : i64, scratch_operands = 0 : i64, tpu.core_type = #tpu.core_type<tc>, window_params = [{transform_indices = @transform_0, window_bounds = array<i64: 256, 512>}, {pipeline_mode = #tpu.pipeline_mode<synchronous>, transform_indices = @transform_1, window_bounds = array<i64: 512, 128>}, {pipeline_mode = #tpu.pipeline_mode<synchronous>, transform_indices = @transform_2, window_bounds = array<i64: 128, 128>}, {transform_indices = @transform_3, window_bounds = array<i64: 256, 128>}]} {
    %c0 = arith.constant 0 : index
    %c0_0 = arith.constant 0 : index
    %0 = vector.load %arg1[%c0, %c0_0] : memref<256x512xbf16, #tpu.memory_space<vmem>>, vector<256x512xbf16>
    %c0_1 = arith.constant 0 : index
    %c0_2 = arith.constant 0 : index
    %1 = vector.load %arg2[%c0_1, %c0_2] : memref<512x128xbf16, #tpu.memory_space<vmem>>, vector<512x128xbf16>
    %cst = arith.constant dense<0.000000e+00> : vector<256x128xf32>
    %2 = tpu.matmul %0, %1, %cst {dimension_numbers = #tpu.dot_dimension_numbers<[1], [0], [0], [1], [0, 0, 1, 1], [], []>} : vector<256x512xbf16>, vector<512x128xbf16>, vector<256x128xf32> -> vector<256x128xf32>
    %3 = arith.truncf %2 : vector<256x128xf32> to vector<256x128xbf16>
    %c0_3 = arith.constant 0 : index
    %c0_4 = arith.constant 0 : index
    %4 = vector.load %arg3[%c0_3, %c0_4] : memref<128x128xbf16, #tpu.memory_space<vmem>>, vector<128x128xbf16>
    %cst_5 = arith.constant dense<0.000000e+00> : vector<256x128xf32>
    %5 = tpu.matmul %3, %4, %cst_5 {dimension_numbers = #tpu.dot_dimension_numbers<[1], [0], [0], [1], [0, 0, 1, 1], [], []>} : vector<256x128xbf16>, vector<128x128xbf16>, vector<256x128xf32> -> vector<256x128xf32>
    %cst_6 = arith.constant 0.000000e+00 : f32
    %6 = vector.broadcast %cst_6 : f32 to vector<256x128xf32>
    %7 = arith.maximumf %5, %6 : vector<256x128xf32>
    %8 = arith.truncf %7 : vector<256x128xf32> to vector<256x128xbf16>
    %c0_7 = arith.constant 0 : index
    %c0_8 = arith.constant 0 : index
    %9 = vector.load %arg4[%c0_7, %c0_8] : memref<256x128xbf16, #tpu.memory_space<vmem>>, vector<256x128xbf16>
    tpu.vector_store %arg4[%c0_7, %c0_8], %8 {strides = array<i32>} : memref<256x128xbf16, #tpu.memory_space<vmem>>, vector<256x128xbf16>,
    return
  }
  func.func @transform_0(%arg0: i32) -> (i32, i32) {
    %c0_i32 = arith.constant 0 : i32
    %c0_i32_0 = arith.constant 0 : i32
    return %arg0, %c0_i32 : i32, i32
  }
  func.func @transform_1(%arg0: i32) -> (i32, i32) {
    %c0_i32 = arith.constant 0 : i32
    %c0_i32_0 = arith.constant 0 : i32
    %c0_i32_1 = arith.constant 0 : i32
    return %c0_i32, %c0_i32_0 : i32, i32
  }
  func.func @transform_2(%arg0: i32) -> (i32, i32) {
    %c0_i32 = arith.constant 0 : i32
    %c0_i32_0 = arith.constant 0 : i32
    %c0_i32_1 = arith.constant 0 : i32
    return %c0_i32, %c0_i32_0 : i32, i32
  }
  func.func @transform_3(%arg0: i32) -> (i32, i32) {
    %c0_i32 = arith.constant 0 : i32
    %c0_i32_0 = arith.constant 0 : i32
    return %arg0, %c0_i32 : i32, i32
  }
}

module attributes {stable_mosaic.version = 11 : i64} {
  func.func @_gcn_layer_kernel(%arg0: i32, %arg1: memref<256x512xbf16, #tpu.memory_space<vmem>>, %arg2: memref<512x128xbf16, #tpu.memory_space<vmem>>, %arg3: memref<128x128xbf16, #tpu.memory_space<vmem>>, %arg4: memref<256x128xf32, #tpu.memory_space<vmem>>) attributes {dimension_semantics = [#tpu.dimension_semantics<parallel>], iteration_bounds = array<i64: 2>, scalar_prefetch = 0 : i64, scratch_operands = 0 : i64, tpu.core_type = #tpu.core_type<tc>, window_params = [{transform_indices = @transform_0, window_bounds = array<i64: 256, 512>}, {pipeline_mode = #tpu.pipeline_mode<synchronous>, transform_indices = @transform_1, window_bounds = array<i64: 512, 128>}, {pipeline_mode = #tpu.pipeline_mode<synchronous>, transform_indices = @transform_2, window_bounds = array<i64: 128, 128>}, {transform_indices = @transform_3, window_bounds = array<i64: 256, 128>}]} {
    %c0 = arith.constant 0 : index
    %c0_0 = arith.constant 0 : index
    %0 = vector.load %arg1[%c0, %c0_0] : memref<256x512xbf16, #tpu.memory_space<vmem>>, vector<256x512xbf16>
    %c0_1 = arith.constant 0 : index
    %c0_2 = arith.constant 0 : index
    %1 = vector.load %arg2[%c0_1, %c0_2] : memref<512x128xbf16, #tpu.memory_space<vmem>>, vector<512x128xbf16>
    %cst = arith.constant dense<0.000000e+00> : vector<256x128xf32>
    %2 = tpu.matmul %0, %1, %cst {dimension_numbers = #tpu.dot_dimension_numbers<[1], [0], [0], [1], [0, 0, 1, 1], [], []>} : vector<256x512xbf16>, vector<512x128xbf16>, vector<256x128xf32> -> vector<256x128xf32>
    %3 = arith.truncf %2 : vector<256x128xf32> to vector<256x128xbf16>
    %c0_3 = arith.constant 0 : index
    %c0_4 = arith.constant 0 : index
    %4 = vector.load %arg3[%c0_3, %c0_4] : memref<128x128xbf16, #tpu.memory_space<vmem>>, vector<128x128xbf16>
    %cst_5 = arith.constant dense<0.000000e+00> : vector<256x128xf32>
    %5 = tpu.matmul %3, %4, %cst_5 {dimension_numbers = #tpu.dot_dimension_numbers<[1], [0], [0], [1], [0, 0, 1, 1], [], []>} : vector<256x128xbf16>, vector<128x128xbf16>, vector<256x128xf32> -> vector<256x128xf32>
    %c0_6 = arith.constant 0 : index
    %c0_7 = arith.constant 0 : index
    %6 = vector.load %arg4[%c0_6, %c0_7] : memref<256x128xf32, #tpu.memory_space<vmem>>, vector<256x128xf32>
    tpu.vector_store %arg4[%c0_6, %c0_7], %5 {strides = array<i32>} : memref<256x128xf32, #tpu.memory_space<vmem>>, vector<256x128xf32>,
    return
  }
  func.func @transform_0(%arg0: i32) -> (i32, i32) {
    %c0_i32 = arith.constant 0 : i32
    %c0_i32_0 = arith.constant 0 : i32
    return %arg0, %c0_i32 : i32, i32
  }
  func.func @transform_1(%arg0: i32) -> (i32, i32) {
    %c0_i32 = arith.constant 0 : i32
    %c0_i32_0 = arith.constant 0 : i32
    %c0_i32_1 = arith.constant 0 : i32
    return %c0_i32, %c0_i32_0 : i32, i32
  }
  func.func @transform_2(%arg0: i32) -> (i32, i32) {
    %c0_i32 = arith.constant 0 : i32
    %c0_i32_0 = arith.constant 0 : i32
    %c0_i32_1 = arith.constant 0 : i32
    return %c0_i32, %c0_i32_0 : i32, i32
  }
  func.func @transform_3(%arg0: i32) -> (i32, i32) {
    %c0_i32 = arith.constant 0 : i32
    %c0_i32_0 = arith.constant 0 : i32
    return %arg0, %c0_i32 : i32, i32
  }
}

</mosaic_0001>

<bundles_post_ra>
// kernel: gcn_e_forward.4
= control target key start
LH: loop header
LB: loop body
LE: loop exit
PB: predicated region body
PF: predicated region fallthrough
CT: control target
= control target key end

     0   :  { %s1262_s9 = smov 0   ;;  %s1264_s10 = smov 0   ;;  %s1590_s0 = inlined_call_operand.vmem [shape: bf16[512,128], index: 0, kind: input, shape index: {}, may-alias: {0,1}]   ;;  %s1591_s1 = inlined_call_operand.vmem [shape: bf16[512,128], index: 1, kind: input, shape index: {}, may-alias: {0,1}]   ;;  %s1592_s2 = inlined_call_operand.vmem [shape: f32[512,512], index: 2, kind: output, shape index: {}]  }
   0x1   :  { %s1266_s11 = smov 0   ;;  %s1268_s12 = smov 0  }
   0x2   :  { %s1270_s13 = smov 0   ;;  %s1272_s14 = smov 0  }
   0x3   :  { %s1274_s15 = smov 0  }
   0x4 LB: > { %s21_s16 = sadd.s32 1, %s1237_s13  ;;  %s24_s17 = sadd.s32 1, %s1241_s14  ;;  %s1245_s15 = sphi %s1274_s15, %s12_s15   ;;  %s1241_s14 = sphi %s1272_s14, %s1599_s14   ;;  %s1237_s13 = sphi %s1270_s13, %s1598_s13   ;;  %s1233_s12 = sphi %s1268_s12, %s1597_s12   ;;  %s1229_s11 = sphi %s1266_s11, %s1596_s11   ;;  %s1225_s10 = sphi %s1264_s10, %s1595_s10   ;;  %s1221_s9 = sphi %s1262_s9, %s1594_s9  }
   0x5   : > { %p22_p0 = scmp.ge.s32.totalorder %s21_s16, 2  ;;  %s989_s18 = sadd.s32 4294967295, %s1245_s15  }
   0x6   : > { %p95_p1 = scmp.ne.s32.totalorder %s1225_s10, %s1221_s9  ;;  %p96_p2 = scmp.eq.s32.totalorder %s989_s18, 3 }
   0x7   : > { %s1601_s16 = smov (%p22_p0, %s21_s16), 0  ;;  %s1603_s17 = smov (!%p22_p0, %s24_s17), %s1241_s14 }
   0x8   : > { %s81_s19 = ssub.s32 %s1237_s13, %s1601_s16  ;;  %p26_p3 = scmp.ge.s32.totalorder %s1603_s17, 2 }
   0x9   : > { %p993_p4 = scmp.ge.s32.totalorder %s1245_s15, 1  ;;  %p1308_p5 = por %p96_p2, %p95_p1 }
   0xa   : > { %p138_p6 = scmp.lt.s32.totalorder %s1245_s15, 5  ;;  %s1605_s17 = smov (%p26_p3, %s1603_s17), 0 }
   0xb   : > { %s80_s21 = ssub.s32 %s1241_s14, %s1605_s17  ;;  %s85_s23 = sadd.s32 1, %s1225_s10 }
   0xc   : > { %p139_p7 = pnand %p993_p4, %p138_p6  ;;  %s82_s22 = sor.u32 %s81_s19, %s80_s21 }
   0xd   : > { %p83_p8 = scmp.eq.s32.totalorder %s82_s22, 0  ;;  %s997_s25 = sshll.u32 (!%p139_p7), %s1229_s11, 5 }
   0xe   : > { %142 = sbr.rel (%p139_p7) target bundleno = 383 (0x17f), region = 28  ;;  %p171_p9 = scmp.lt.s32.totalorder (!%p139_p7), %s997_s25, 63 }
   0xf   : > { %s1319_s24 = scalar_select %p83_p8, %s1225_s10, %s85_s23  }
  0x10   : > { %s995_s30 = sshll.u32 (!%p139_p7), %s1233_s12, 5  ;;  %s161_s7 = sand.u32 (!%p139_p7), 1, %s1221_s9  }
  0x11   : > { %p165_p10 = scmp.lt.s32.totalorder (!%p139_p7), %s995_s30, 63  ;;  %s994_s8 = sshll.u32 (!%p139_p7), %s161_s7, 9 }
  0x12   : > { %s1366_s18 = scalar_lea.vmem (!%p139_p7), [#allocation2], %s994_s8 }
  0x15   : > { %s1607_s25 = smov (!%p171_p9, %s997_s25), 63  ;;  %s1609_s30 = smov (!%p165_p10, %s995_s30), 63 }
  0x16   : > { %s998_s26 = sshll.u32 %s1607_s25, 2  ;;  %s996_s3 = sshll.u32 %s1609_s30, 2 }
  0x17   : > { %s1325_s29 = scalar_lea.vmem %s1591_s1, %s998_s26  ;;  %s1336_s6 = scalar_lea.vmem %s1590_s0, %s996_s3 }
  0x18   : > { %v1159_v0 = vld [vmem:[%s1325_s29 + $0x40] sm:$0xff]   ;;  %v1161_v2 = vld [vmem:[%s1325_s29 + $0x48] sm:$0xff]   ;;  %v1163_v4 = vld [vmem:[%s1325_s29 + $0x50] sm:$0xff]   ;;  %s1033_s9 = sshll.u32 (%p1308_p5), %s1229_s11, 1  ;;  %s1038_s19 = sshll.u32 (%p1308_p5), %s1233_s12, 7 }
  0x19   : > { %v1160_v1 = vld [vmem:[%s1325_s29] sm:$0xff]   ;;  %1039 = vmatprep.subr.bf16.mxu0 %v1159_v0  ;;  %1087 = vmatprep.subr.bf16.mxu1 %v1159_v0  ;;  %v1162_v3 = vld [vmem:[%s1325_s29 + $0x8] sm:$0xff]   ;;  %v1164_v5 = vld [vmem:[%s1325_s29 + $0x10] sm:$0xff]   ;;  %s766_s20 = sadd.s32 (%p1308_p5), %s1038_s19, %s1033_s9 }
  0x1a   : > { %1040 = vmatpush3.bf16.xpose.msra.mxu0 %v1160_v1  ;;  %1095 = vmatpush3.bf16.xpose.msra.mxu1 %v1160_v1  ;;  %v1165_v6 = vld [vmem:[%s1325_s29 + $0x58] sm:$0xff]   ;;  %v1175_v7 = vld [vmem:[%s1336_s6] sm:$0xff]   ;;  %v1169_v12 = vld [vmem:[%s1325_s29 + $0x68] sm:$0xff]   ;;  %s1035_s21 = sshll.u32 (%p1308_p5), %s766_s20, 3 }
  0x1b   : > { %1041 = vmatprep.subr.bf16.mxu0 %v1161_v2  ;;  %1088 = vmatprep.subr.bf16.mxu1 %v1161_v2  ;;  %v1176_v8 = vld [vmem:[%s1336_s6 + $0x40] sm:$0xff]   ;;  %v1166_v9 = vld [vmem:[%s1325_s29 + $0x18] sm:$0xff]   ;;  %v1170_v13 = vld [vmem:[%s1325_s29 + $0x28] sm:$0xff]   ;;  %s1448_s25 = scalar_lea.vmem (%p1308_p5), %s1592_s2, %s1035_s21 }
  0x1c   : > { %1055 = vmatprep.mubr.bf16.mxu0 %v1175_v7  ;;  %1071 = vmatprep.mubr.bf16.mxu1 %v1176_v8  ;;  %v1167_v10 = vld [vmem:[%s1325_s29 + $0x60] sm:$0xff]   ;;  %v1171_v14 = vld [vmem:[%s1325_s29 + $0x70] sm:$0xff]   ;;  %v1173_v16 = vld [vmem:[%s1325_s29 + $0x78] sm:$0xff]  }
  0x1d   : > { %v1168_v11 = vld [vmem:[%s1325_s29 + $0x20] sm:$0xff]   ;;  %v1172_v15 = vld [vmem:[%s1325_s29 + $0x30] sm:$0xff]   ;;  %v1174_v17 = vld [vmem:[%s1325_s29 + $0x38] sm:$0xff]  }
  0x1e   : > { %v1177_v18 = vld [vmem:[%s1336_s6 + $0x8] sm:$0xff]   ;;  %v1179_v20 = vld [vmem:[%s1336_s6 + $0x10] sm:$0xff]   ;;  %v1181_v22 = vld [vmem:[%s1336_s6 + $0x18] sm:$0xff]  }
  0x1f   : > { %v1178_v19 = vld [vmem:[%s1336_s6 + $0x48] sm:$0xff]   ;;  %v1180_v21 = vld [vmem:[%s1336_s6 + $0x50] sm:$0xff]   ;;  %v1182_v23 = vld [vmem:[%s1336_s6 + $0x58] sm:$0xff]  }
  0x20   : > { %v1183_v24 = vld [vmem:[%s1336_s6 + $0x20] sm:$0xff]   ;;  %v1185_v26 = vld [vmem:[%s1336_s6 + $0x28] sm:$0xff]   ;;  %v1187_v28 = vld [vmem:[%s1336_s6 + $0x30] sm:$0xff]  }
  0x21   : > { %v1184_v25 = vld [vmem:[%s1336_s6 + $0x60] sm:$0xff]   ;;  %v1186_v27 = vld [vmem:[%s1336_s6 + $0x68] sm:$0xff]   ;;  %v1188_v29 = vld [vmem:[%s1336_s6 + $0x70] sm:$0xff]  }
  0x22   : > { %1042 = vmatpush3.bf16.xpose.msra.mxu0 %v1162_v3  ;;  %1096 = vmatpush3.bf16.xpose.msra.mxu1 %v1162_v3  ;;  %v1189_v30 = vld [vmem:[%s1336_s6 + $0x38] sm:$0xff]  }
  0x23   : > { %1043 = vmatprep.subr.bf16.mxu0 %v1163_v4  ;;  %1089 = vmatprep.subr.bf16.mxu1 %v1163_v4  ;;  %v1190_v31 = vld [vmem:[%s1336_s6 + $0x78] sm:$0xff]  }
  0x2a   : > { %1044 = vmatpush3.bf16.xpose.msra.mxu0 %v1164_v5  ;;  %1097 = vmatpush3.bf16.xpose.msra.mxu1 %v1164_v5 }
  0x2b   : > { %1045 = vmatprep.subr.bf16.mxu0 %v1165_v6  ;;  %1090 = vmatprep.subr.bf16.mxu1 %v1165_v6 }
  0x32   : > { %1046 = vmatpush3.bf16.xpose.msra.mxu0 %v1166_v9  ;;  %1098 = vmatpush3.bf16.xpose.msra.mxu1 %v1166_v9 }
  0x33   : > { %1047 = vmatprep.subr.bf16.mxu0 %v1167_v10  ;;  %1091 = vmatprep.subr.bf16.mxu1 %v1167_v10 }
  0x3a   : > { %1048 = vmatpush3.bf16.xpose.msra.mxu0 %v1168_v11  ;;  %1099 = vmatpush3.bf16.xpose.msra.mxu1 %v1168_v11 }
  0x3b   : > { %1049 = vmatprep.subr.bf16.mxu0 %v1169_v12  ;;  %1092 = vmatprep.subr.bf16.mxu1 %v1169_v12 }
  0x42   : > { %1050 = vmatpush3.bf16.xpose.msra.mxu0 %v1170_v13  ;;  %1100 = vmatpush3.bf16.xpose.msra.mxu1 %v1170_v13 }
  0x43   : > { %1051 = vmatprep.subr.bf16.mxu0 %v1171_v14  ;;  %1093 = vmatprep.subr.bf16.mxu1 %v1171_v14 }
  0x4a   : > { %1052 = vmatpush3.bf16.xpose.msra.mxu0 %v1172_v15  ;;  %1101 = vmatpush3.bf16.xpose.msra.mxu1 %v1172_v15 }
  0x4b   : > { %1053 = vmatprep.subr.bf16.mxu0 %v1173_v16  ;;  %1094 = vmatprep.subr.bf16.mxu1 %v1173_v16 }
  0x52   : > { %1054 = vmatpush3.bf16.xpose.msra.mxu0 %v1174_v17  ;;  %1102 = vmatpush3.bf16.xpose.msra.mxu1 %v1174_v17 }
  0x59   : > { %1056 = vmatmul.mubr.bf16.vlgmr.msra.gmra.mrb[0].mxu0 %v1175_v7  ;;  %1072 = vmatmul.mubr.bf16.vlgmr.msra.gmra.mrb[0].mxu1 %v1176_v8 }
  0x5a   : > { %1057 = vmatprep.mubr.bf16.mxu0 %v1177_v18  ;;  %1073 = vmatprep.mubr.bf16.mxu1 %v1178_v19 }
  0x61   : > { %1058 = vmatmul.mubr.bf16.gmra.mrb[4].mxu0 %v1177_v18  ;;  %1074 = vmatmul.mubr.bf16.gmra.mrb[4].mxu1 %v1178_v19 }
  0x62   : > { %1059 = vmatprep.mubr.bf16.mxu0 %v1179_v20  ;;  %1075 = vmatprep.mubr.bf16.mxu1 %v1180_v21 }
  0x69   : > { %1060 = vmatmul.mubr.bf16.gmra.mrb[8].mxu0 %v1179_v20  ;;  %1076 = vmatmul.mubr.bf16.gmra.mrb[8].mxu1 %v1180_v21 }
  0x6a   : > { %1061 = vmatprep.mubr.bf16.mxu0 %v1181_v22  ;;  %1077 = vmatprep.mubr.bf16.mxu1 %v1182_v23 }
  0x71   : > { %1062 = vmatmul.mubr.bf16.gmra.mrb[12].mxu0 %v1181_v22  ;;  %1078 = vmatmul.mubr.bf16.gmra.mrb[12].mxu1 %v1182_v23 }
  0x72   : > { %1063 = vmatprep.mubr.bf16.mxu0 %v1183_v24  ;;  %1079 = vmatprep.mubr.bf16.mxu1 %v1184_v25 }
  0x79   : > { %1064 = vmatmul.mubr.bf16.gmra.mrb[16].mxu0 %v1183_v24  ;;  %1080 = vmatmul.mubr.bf16.gmra.mrb[16].mxu1 %v1184_v25 }
  0x7a   : > { %1065 = vmatprep.mubr.bf16.mxu0 %v1185_v26  ;;  %1081 = vmatprep.mubr.bf16.mxu1 %v1186_v27 }
  0x81   : > { %1066 = vmatmul.mubr.bf16.gmra.mrb[20].mxu0 %v1185_v26  ;;  %1082 = vmatmul.mubr.bf16.gmra.mrb[20].mxu1 %v1186_v27 }
  0x82   : > { %1067 = vmatprep.mubr.bf16.mxu0 %v1187_v28  ;;  %1083 = vmatprep.mubr.bf16.mxu1 %v1188_v29 }
  0x89   : > { %1068 = vmatmul.mubr.bf16.gmra.mrb[24].mxu0 %v1187_v28  ;;  %1084 = vmatmul.mubr.bf16.gmra.mrb[24].mxu1 %v1188_v29 }
  0x8a   : > { %1069 = vmatprep.mubr.bf16.mxu0 %v1189_v30  ;;  %1085 = vmatprep.mubr.bf16.mxu1 %v1190_v31 }
  0x91   : > { %1070 = vmatmul.mubr.bf16.gmra.mrb[28].mxu0 %v1189_v30  ;;  %1086 = vmatmul.mubr.bf16.gmra.mrb[28].mxu1 %v1190_v31 }
 0x12c   : > { %v469_v32 = vpop.f32.mrb[0].mxu0  ;;  %v549_v33 = vpop.f32.mrb[0].mxu1 }
 0x12d   : > { %v628_v34 = vmax.f32 %v469_v32, 0.0  ;;  %v660_v35 = vmax.f32 %v549_v33, 0.0  ;;  %v471_v36 = vpop.f32.mrb[1].mxu0  ;;  %v551_v37 = vpop.f32.mrb[1].mxu1 }
 0x12e   : > { %v629_v38 = vmax.f32 %v471_v36, 0.0  ;;  %v661_v39 = vmax.f32 %v551_v37, 0.0  ;;  %v473_v40 = vpop.f32.mrb[2].mxu0  ;;  %v553_v41 = vpop.f32.mrb[2].mxu1 }
 0x12f   : > { %692 = vst [vmem:[%s1366_s18] sm:$0xff] %v628_v34  ;;  %724 = vst [vmem:[%s1366_s18 + $0x100] sm:$0xff] %v660_v35  ;;  %v630_v42 = vmax.f32 %v473_v40, 0.0  ;;  %v662_v43 = vmax.f32 %v553_v41, 0.0  ;;  %v475_v44 = vpop.f32.mrb[3].mxu0  ;;  %v555_v45 = vpop.f32.mrb[3].mxu1 }
 0x130   : > { %693 = vst [vmem:[%s1366_s18 + $0x8] sm:$0xff] %v629_v38  ;;  %725 = vst [vmem:[%s1366_s18 + $0x108] sm:$0xff] %v661_v39  ;;  %v631_v46 = vmax.f32 %v475_v44, 0.0  ;;  %v663_v47 = vmax.f32 %v555_v45, 0.0 }
 0x131   : > { %694 = vst [vmem:[%s1366_s18 + $0x10] sm:$0xff] %v630_v42  ;;  %726 = vst [vmem:[%s1366_s18 + $0x110] sm:$0xff] %v662_v43 }
 0x132   : > { %695 = vst [vmem:[%s1366_s18 + $0x18] sm:$0xff] %v631_v46  ;;  %727 = vst [vmem:[%s1366_s18 + $0x118] sm:$0xff] %v663_v47 }
 0x134   : > { %v479_v48 = vpop.f32.mrb[4].mxu0  ;;  %v559_v49 = vpop.f32.mrb[4].mxu1 }
 0x135   : > { %v632_v50 = vmax.f32 %v479_v48, 0.0  ;;  %v664_v51 = vmax.f32 %v559_v49, 0.0  ;;  %v481_v52 = vpop.f32.mrb[5].mxu0  ;;  %v561_v53 = vpop.f32.mrb[5].mxu1 }
 0x136   : > { %v633_v54 = vmax.f32 %v481_v52, 0.0  ;;  %v665_v55 = vmax.f32 %v561_v53, 0.0  ;;  %v483_v56 = vpop.f32.mrb[6].mxu0  ;;  %v563_v57 = vpop.f32.mrb[6].mxu1 }
 0x137   : > { %696 = vst [vmem:[%s1366_s18 + $0x20] sm:$0xff] %v632_v50  ;;  %728 = vst [vmem:[%s1366_s18 + $0x120] sm:$0xff] %v664_v51  ;;  %v634_v58 = vmax.f32 %v483_v56, 0.0  ;;  %v666_v59 = vmax.f32 %v563_v57, 0.0  ;;  %v485_v60 = vpop.f32.mrb[7].mxu0  ;;  %v565_v61 = vpop.f32.mrb[7].mxu1 }
 0x138   : > { %697 = vst [vmem:[%s1366_s18 + $0x28] sm:$0xff] %v633_v54  ;;  %729 = vst [vmem:[%s1366_s18 + $0x128] sm:$0xff] %v665_v55  ;;  %v635_v62 = vmax.f32 %v485_v60, 0.0  ;;  %v667_v63 = vmax.f32 %v565_v61, 0.0 }
 0x139   : > { %698 = vst [vmem:[%s1366_s18 + $0x30] sm:$0xff] %v634_v58  ;;  %730 = vst [vmem:[%s1366_s18 + $0x130] sm:$0xff] %v666_v59 }
 0x13a   : > { %699 = vst [vmem:[%s1366_s18 + $0x38] sm:$0xff] %v635_v62  ;;  %731 = vst [vmem:[%s1366_s18 + $0x138] sm:$0xff] %v667_v63 }
 0x13c   : > { %v489_v0 = vpop.f32.mrb[8].mxu0  ;;  %v569_v1 = vpop.f32.mrb[8].mxu1 }
 0x13d   : > { %v636_v2 = vmax.f32 %v489_v0, 0.0  ;;  %v668_v3 = vmax.f32 %v569_v1, 0.0  ;;  %v491_v4 = vpop.f32.mrb[9].mxu0  ;;  %v571_v5 = vpop.f32.mrb[9].mxu1 }
 0x13e   : > { %v637_v6 = vmax.f32 %v491_v4, 0.0  ;;  %v669_v7 = vmax.f32 %v571_v5, 0.0  ;;  %v493_v8 = vpop.f32.mrb[10].mxu0  ;;  %v573_v9 = vpop.f32.mrb[10].mxu1 }
 0x13f   : > { %700 = vst [vmem:[%s1366_s18 + $0x40] sm:$0xff] %v636_v2  ;;  %732 = vst [vmem:[%s1366_s18 + $0x140] sm:$0xff] %v668_v3  ;;  %v638_v10 = vmax.f32 %v493_v8, 0.0  ;;  %v670_v11 = vmax.f32 %v573_v9, 0.0  ;;  %v495_v12 = vpop.f32.mrb[11].mxu0  ;;  %v575_v13 = vpop.f32.mrb[11].mxu1 }
 0x140   : > { %701 = vst [vmem:[%s1366_s18 + $0x48] sm:$0xff] %v637_v6  ;;  %733 = vst [vmem:[%s1366_s18 + $0x148] sm:$0xff] %v669_v7  ;;  %v639_v14 = vmax.f32 %v495_v12, 0.0  ;;  %v671_v15 = vmax.f32 %v575_v13, 0.0 }
 0x141   : > { %702 = vst [vmem:[%s1366_s18 + $0x50] sm:$0xff] %v638_v10  ;;  %734 = vst [vmem:[%s1366_s18 + $0x150] sm:$0xff] %v670_v11 }
 0x142   : > { %703 = vst [vmem:[%s1366_s18 + $0x58] sm:$0xff] %v639_v14  ;;  %735 = vst [vmem:[%s1366_s18 + $0x158] sm:$0xff] %v671_v15 }
 0x144   : > { %v499_v16 = vpop.f32.mrb[12].mxu0  ;;  %v579_v17 = vpop.f32.mrb[12].mxu1 }
 0x145   : > { %v640_v18 = vmax.f32 %v499_v16, 0.0  ;;  %v672_v19 = vmax.f32 %v579_v17, 0.0  ;;  %v501_v20 = vpop.f32.mrb[13].mxu0  ;;  %v581_v21 = vpop.f32.mrb[13].mxu1 }
 0x146   : > { %v641_v22 = vmax.f32 %v501_v20, 0.0  ;;  %v673_v23 = vmax.f32 %v581_v21, 0.0  ;;  %v503_v24 = vpop.f32.mrb[14].mxu0  ;;  %v583_v25 = vpop.f32.mrb[14].mxu1 }
 0x147   : > { %704 = vst [vmem:[%s1366_s18 + $0x60] sm:$0xff] %v640_v18  ;;  %736 = vst [vmem:[%s1366_s18 + $0x160] sm:$0xff] %v672_v19  ;;  %v642_v26 = vmax.f32 %v503_v24, 0.0  ;;  %v674_v27 = vmax.f32 %v583_v25, 0.0  ;;  %v505_v28 = vpop.f32.mrb[15].mxu0  ;;  %v585_v29 = vpop.f32.mrb[15].mxu1 }
 0x148   : > { %705 = vst [vmem:[%s1366_s18 + $0x68] sm:$0xff] %v641_v22  ;;  %737 = vst [vmem:[%s1366_s18 + $0x168] sm:$0xff] %v673_v23  ;;  %v643_v30 = vmax.f32 %v505_v28, 0.0  ;;  %v675_v31 = vmax.f32 %v585_v29, 0.0 }
 0x149   : > { %706 = vst [vmem:[%s1366_s18 + $0x70] sm:$0xff] %v642_v26  ;;  %738 = vst [vmem:[%s1366_s18 + $0x170] sm:$0xff] %v674_v27 }
 0x14a   : > { %707 = vst [vmem:[%s1366_s18 + $0x78] sm:$0xff] %v643_v30  ;;  %739 = vst [vmem:[%s1366_s18 + $0x178] sm:$0xff] %v675_v31 }
 0x14c   : > { %v509_v32 = vpop.f32.mrb[16].mxu0  ;;  %v589_v33 = vpop.f32.mrb[16].mxu1 }
 0x14d   : > { %v644_v34 = vmax.f32 %v509_v32, 0.0  ;;  %v676_v35 = vmax.f32 %v589_v33, 0.0  ;;  %v511_v36 = vpop.f32.mrb[17].mxu0  ;;  %v591_v37 = vpop.f32.mrb[17].mxu1  ;;  %v781_v32 = vld [vmem:[%s1366_s18] sm:$0xff] (%p1308_p5)  ;;  %v783_v33 = vld [vmem:[%s1366_s18 + $0x8] sm:$0xff] (%p1308_p5) }
 0x14e   : > { %v645_v38 = vmax.f32 %v511_v36, 0.0  ;;  %v677_v39 = vmax.f32 %v591_v37, 0.0  ;;  %v513_v40 = vpop.f32.mrb[18].mxu0  ;;  %v593_v41 = vpop.f32.mrb[18].mxu1  ;;  %v789_v36 = vld [vmem:[%s1366_s18 + $0x20] sm:$0xff] (%p1308_p5)  ;;  %v791_v37 = vld [vmem:[%s1366_s18 + $0x28] sm:$0xff] (%p1308_p5)  ;;  %782 = vst [vmem:[%s1448_s25] sm:$0xff] (%p1308_p5), %v781_v32 }
 0x14f   : > { %708 = vst [vmem:[%s1366_s18 + $0x80] sm:$0xff] %v644_v34  ;;  %740 = vst [vmem:[%s1366_s18 + $0x180] sm:$0xff] %v676_v35  ;;  %v646_v42 = vmax.f32 %v513_v40, 0.0  ;;  %v678_v43 = vmax.f32 %v593_v41, 0.0  ;;  %v515_v44 = vpop.f32.mrb[19].mxu0  ;;  %v595_v45 = vpop.f32.mrb[19].mxu1 }
 0x150   : > { %709 = vst [vmem:[%s1366_s18 + $0x88] sm:$0xff] %v645_v38  ;;  %741 = vst [vmem:[%s1366_s18 + $0x188] sm:$0xff] %v677_v39  ;;  %v647_v46 = vmax.f32 %v515_v44, 0.0  ;;  %v679_v47 = vmax.f32 %v595_v45, 0.0  ;;  %v785_v34 = vld [vmem:[%s1366_s18 + $0x10] sm:$0xff] (%p1308_p5)  ;;  %v787_v35 = vld [vmem:[%s1366_s18 + $0x18] sm:$0xff] (%p1308_p5) }
 0x151   : > { %710 = vst [vmem:[%s1366_s18 + $0x90] sm:$0xff] %v646_v42  ;;  %742 = vst [vmem:[%s1366_s18 + $0x190] sm:$0xff] %v678_v43  ;;  %v793_v38 = vld [vmem:[%s1366_s18 + $0x30] sm:$0xff] (%p1308_p5)  ;;  %v795_v39 = vld [vmem:[%s1366_s18 + $0x38] sm:$0xff] (%p1308_p5) }
 0x152   : > { %711 = vst [vmem:[%s1366_s18 + $0x98] sm:$0xff] %v647_v46  ;;  %743 = vst [vmem:[%s1366_s18 + $0x198] sm:$0xff] %v679_v47  ;;  %v797_v40 = vld [vmem:[%s1366_s18 + $0x40] sm:$0xff] (%p1308_p5)  ;;  %v799_v41 = vld [vmem:[%s1366_s18 + $0x48] sm:$0xff] (%p1308_p5) }
 0x153   : > { %v801_v42 = vld [vmem:[%s1366_s18 + $0x50] sm:$0xff] (%p1308_p5)  ;;  %v803_v43 = vld [vmem:[%s1366_s18 + $0x58] sm:$0xff] (%p1308_p5)  ;;  %784 = vst [vmem:[%s1448_s25 + $0x8] sm:$0xff] (%p1308_p5), %v783_v33  ;;  %786 = vst [vmem:[%s1448_s25 + $0x20] sm:$0xff] (%p1308_p5), %v785_v34 }
 0x154   : > { %v519_v48 = vpop.f32.mrb[20].mxu0  ;;  %v599_v49 = vpop.f32.mrb[20].mxu1  ;;  %788 = vst [vmem:[%s1448_s25 + $0x28] sm:$0xff] (%p1308_p5), %v787_v35  ;;  %790 = vst [vmem:[%s1448_s25 + $0x40] sm:$0xff] (%p1308_p5), %v789_v36  ;;  %v805_v44 = vld [vmem:[%s1366_s18 + $0x60] sm:$0xff] (%p1308_p5)  ;;  %v807_v45 = vld [vmem:[%s1366_s18 + $0x68] sm:$0xff] (%p1308_p5) }
 0x155   : > { %v648_v50 = vmax.f32 %v519_v48, 0.0  ;;  %v680_v51 = vmax.f32 %v599_v49, 0.0  ;;  %v521_v52 = vpop.f32.mrb[21].mxu0  ;;  %v601_v53 = vpop.f32.mrb[21].mxu1  ;;  %792 = vst [vmem:[%s1448_s25 + $0x48] sm:$0xff] (%p1308_p5), %v791_v37  ;;  %794 = vst [vmem:[%s1448_s25 + $0x60] sm:$0xff] (%p1308_p5), %v793_v38 }
 0x156   : > { %v649_v54 = vmax.f32 %v521_v52, 0.0  ;;  %v681_v55 = vmax.f32 %v601_v53, 0.0  ;;  %v523_v56 = vpop.f32.mrb[22].mxu0  ;;  %v603_v57 = vpop.f32.mrb[22].mxu1  ;;  %796 = vst [vmem:[%s1448_s25 + $0x68] sm:$0xff] (%p1308_p5), %v795_v39  ;;  %798 = vst [vmem:[%s1448_s25 + $0x80] sm:$0xff] (%p1308_p5), %v797_v40 }
 0x157   : > { %712 = vst [vmem:[%s1366_s18 + $0xa0] sm:$0xff] %v648_v50  ;;  %744 = vst [vmem:[%s1366_s18 + $0x1a0] sm:$0xff] %v680_v51  ;;  %v650_v58 = vmax.f32 %v523_v56, 0.0  ;;  %v682_v59 = vmax.f32 %v603_v57, 0.0  ;;  %v525_v60 = vpop.f32.mrb[23].mxu0  ;;  %v605_v61 = vpop.f32.mrb[23].mxu1 }
 0x158   : > { %713 = vst [vmem:[%s1366_s18 + $0xa8] sm:$0xff] %v649_v54  ;;  %745 = vst [vmem:[%s1366_s18 + $0x1a8] sm:$0xff] %v681_v55  ;;  %v651_v62 = vmax.f32 %v525_v60, 0.0  ;;  %v683_v63 = vmax.f32 %v605_v61, 0.0  ;;  %v809_v46 = vld [vmem:[%s1366_s18 + $0x70] sm:$0xff] (%p1308_p5)  ;;  %v811_v47 = vld [vmem:[%s1366_s18 + $0x78] sm:$0xff] (%p1308_p5) }
 0x159   : > { %714 = vst [vmem:[%s1366_s18 + $0xb0] sm:$0xff] %v650_v58  ;;  %746 = vst [vmem:[%s1366_s18 + $0x1b0] sm:$0xff] %v682_v59  ;;  %v813_v48 = vld [vmem:[%s1366_s18 + $0x80] sm:$0xff] (%p1308_p5)  ;;  %v815_v49 = vld [vmem:[%s1366_s18 + $0x88] sm:$0xff] (%p1308_p5) }
 0x15a   : > { %715 = vst [vmem:[%s1366_s18 + $0xb8] sm:$0xff] %v651_v62  ;;  %747 = vst [vmem:[%s1366_s18 + $0x1b8] sm:$0xff] %v683_v63  ;;  %v817_v50 = vld [vmem:[%s1366_s18 + $0x90] sm:$0xff] (%p1308_p5)  ;;  %v819_v51 = vld [vmem:[%s1366_s18 + $0x98] sm:$0xff] (%p1308_p5) }
 0x15b   : > { %800 = vst [vmem:[%s1448_s25 + $0x88] sm:$0xff] (%p1308_p5), %v799_v41  ;;  %802 = vst [vmem:[%s1448_s25 + $0xa0] sm:$0xff] (%p1308_p5), %v801_v42 }
 0x15c   : > { %v529_v0 = vpop.f32.mrb[24].mxu0  ;;  %v609_v1 = vpop.f32.mrb[24].mxu1  ;;  %804 = vst [vmem:[%s1448_s25 + $0xa8] sm:$0xff] (%p1308_p5), %v803_v43  ;;  %806 = vst [vmem:[%s1448_s25 + $0xc0] sm:$0xff] (%p1308_p5), %v805_v44 }
 0x15d   : > { %v652_v2 = vmax.f32 %v529_v0, 0.0  ;;  %v684_v3 = vmax.f32 %v609_v1, 0.0  ;;  %v531_v4 = vpop.f32.mrb[25].mxu0  ;;  %v611_v5 = vpop.f32.mrb[25].mxu1  ;;  %808 = vst [vmem:[%s1448_s25 + $0xc8] sm:$0xff] (%p1308_p5), %v807_v45  ;;  %810 = vst [vmem:[%s1448_s25 + $0xe0] sm:$0xff] (%p1308_p5), %v809_v46 }
 0x15e   : > { %v653_v6 = vmax.f32 %v531_v4, 0.0  ;;  %v685_v7 = vmax.f32 %v611_v5, 0.0  ;;  %v533_v8 = vpop.f32.mrb[26].mxu0  ;;  %v613_v9 = vpop.f32.mrb[26].mxu1  ;;  %812 = vst [vmem:[%s1448_s25 + $0xe8] sm:$0xff] (%p1308_p5), %v811_v47  ;;  %814 = vst [vmem:[%s1448_s25 + $0x100] sm:$0xff] (%p1308_p5), %v813_v48 }
 0x15f   : > { %716 = vst [vmem:[%s1366_s18 + $0xc0] sm:$0xff] %v652_v2  ;;  %748 = vst [vmem:[%s1366_s18 + $0x1c0] sm:$0xff] %v684_v3  ;;  %v654_v10 = vmax.f32 %v533_v8, 0.0  ;;  %v686_v11 = vmax.f32 %v613_v9, 0.0  ;;  %v535_v12 = vpop.f32.mrb[27].mxu0  ;;  %v615_v13 = vpop.f32.mrb[27].mxu1 }
 0x160   : > { %717 = vst [vmem:[%s1366_s18 + $0xc8] sm:$0xff] %v653_v6  ;;  %749 = vst [vmem:[%s1366_s18 + $0x1c8] sm:$0xff] %v685_v7  ;;  %v655_v14 = vmax.f32 %v535_v12, 0.0  ;;  %v687_v15 = vmax.f32 %v615_v13, 0.0  ;;  %v821_v52 = vld [vmem:[%s1366_s18 + $0xa0] sm:$0xff] (%p1308_p5)  ;;  %v823_v53 = vld [vmem:[%s1366_s18 + $0xa8] sm:$0xff] (%p1308_p5) }
 0x161   : > { %718 = vst [vmem:[%s1366_s18 + $0xd0] sm:$0xff] %v654_v10  ;;  %750 = vst [vmem:[%s1366_s18 + $0x1d0] sm:$0xff] %v686_v11  ;;  %v825_v54 = vld [vmem:[%s1366_s18 + $0xb0] sm:$0xff] (%p1308_p5)  ;;  %v827_v55 = vld [vmem:[%s1366_s18 + $0xb8] sm:$0xff] (%p1308_p5) }
 0x162   : > { %719 = vst [vmem:[%s1366_s18 + $0xd8] sm:$0xff] %v655_v14  ;;  %751 = vst [vmem:[%s1366_s18 + $0x1d8] sm:$0xff] %v687_v15  ;;  %v845_v0 = vld [vmem:[%s1366_s18 + $0x100] sm:$0xff] (%p1308_p5)  ;;  %v847_v1 = vld [vmem:[%s1366_s18 + $0x108] sm:$0xff] (%p1308_p5) }
 0x163   : > { %816 = vst [vmem:[%s1448_s25 + $0x108] sm:$0xff] (%p1308_p5), %v815_v49  ;;  %818 = vst [vmem:[%s1448_s25 + $0x120] sm:$0xff] (%p1308_p5), %v817_v50  ;;  %v849_v2 = vld [vmem:[%s1366_s18 + $0x110] sm:$0xff] (%p1308_p5)  ;;  %v851_v3 = vld [vmem:[%s1366_s18 + $0x118] sm:$0xff] (%p1308_p5) }
 0x164   : > { %v539_v16 = vpop.f32.mrb[28].mxu0  ;;  %v619_v17 = vpop.f32.mrb[28].mxu1  ;;  %762 = sbr.rel (!%p1308_p5) target bundleno = 383 (0x17f), region = 32  ;;  %820 = vst [vmem:[%s1448_s25 + $0x128] sm:$0xff] (%p1308_p5), %v819_v51  ;;  %822 = vst [vmem:[%s1448_s25 + $0x140] sm:$0xff] (%p1308_p5), %v821_v52  ;;  %v853_v4 = vld [vmem:[%s1366_s18 + $0x120] sm:$0xff] (%p1308_p5) }
 0x165   : > { %v656_v18 = vmax.f32 %v539_v16, 0.0  ;;  %v688_v19 = vmax.f32 %v619_v17, 0.0  ;;  %v541_v20 = vpop.f32.mrb[29].mxu0  ;;  %v621_v21 = vpop.f32.mrb[29].mxu1  ;;  %824 = vst [vmem:[%s1448_s25 + $0x148] sm:$0xff] (%p1308_p5), %v823_v53  ;;  %826 = vst [vmem:[%s1448_s25 + $0x160] sm:$0xff] (%p1308_p5), %v825_v54 }
 0x166   : > { %v657_v22 = vmax.f32 %v541_v20, 0.0  ;;  %v689_v23 = vmax.f32 %v621_v21, 0.0  ;;  %v543_v24 = vpop.f32.mrb[30].mxu0  ;;  %v623_v25 = vpop.f32.mrb[30].mxu1  ;;  %828 = vst [vmem:[%s1448_s25 + $0x168] sm:$0xff] (%p1308_p5), %v827_v55  ;;  %v829_v56 = vld [vmem:[%s1366_s18 + $0xc0] sm:$0xff] (%p1308_p5) }
 0x167   : > { %720 = vst [vmem:[%s1366_s18 + $0xe0] sm:$0xff] %v656_v18  ;;  %752 = vst [vmem:[%s1366_s18 + $0x1e0] sm:$0xff] %v688_v19  ;;  %v658_v26 = vmax.f32 %v543_v24, 0.0  ;;  %v690_v27 = vmax.f32 %v623_v25, 0.0  ;;  %v545_v28 = vpop.f32.mrb[31].mxu0  ;;  %v625_v29 = vpop.f32.mrb[31].mxu1 }
 0x168   : > { %721 = vst [vmem:[%s1366_s18 + $0xe8] sm:$0xff] %v657_v22  ;;  %753 = vst [vmem:[%s1366_s18 + $0x1e8] sm:$0xff] %v689_v23  ;;  %v659_v30 = vmax.f32 %v545_v28, 0.0  ;;  %v691_v31 = vmax.f32 %v625_v29, 0.0  ;;  %v831_v57 = vld [vmem:[%s1366_s18 + $0xc8] sm:$0xff] (%p1308_p5)  ;;  %v833_v58 = vld [vmem:[%s1366_s18 + $0xd0] sm:$0xff] (%p1308_p5) }
 0x169   : > { %722 = vst [vmem:[%s1366_s18 + $0xf0] sm:$0xff] %v658_v26  ;;  %754 = vst [vmem:[%s1366_s18 + $0x1f0] sm:$0xff] %v690_v27  ;;  %v835_v59 = vld [vmem:[%s1366_s18 + $0xd8] sm:$0xff] (%p1308_p5)  ;;  %v855_v5 = vld [vmem:[%s1366_s18 + $0x128] sm:$0xff] (%p1308_p5) }
 0x16a   : > { %723 = vst [vmem:[%s1366_s18 + $0xf8] sm:$0xff] %v659_v30  ;;  %755 = vst [vmem:[%s1366_s18 + $0x1f8] sm:$0xff] %v691_v31  ;;  %v857_v6 = vld [vmem:[%s1366_s18 + $0x130] sm:$0xff] (%p1308_p5)  ;;  %v859_v7 = vld [vmem:[%s1366_s18 + $0x138] sm:$0xff] (%p1308_p5) }
 0x16b   : > { %830 = vst [vmem:[%s1448_s25 + $0x180] sm:$0xff] %v829_v56  ;;  %832 = vst [vmem:[%s1448_s25 + $0x188] sm:$0xff] %v831_v57  ;;  %v861_v8 = vld [vmem:[%s1366_s18 + $0x140] sm:$0xff]  ;;  %v863_v9 = vld [vmem:[%s1366_s18 + $0x148] sm:$0xff] }
 0x16c   : > { %834 = vst [vmem:[%s1448_s25 + $0x1a0] sm:$0xff] %v833_v58  ;;  %836 = vst [vmem:[%s1448_s25 + $0x1a8] sm:$0xff] %v835_v59  ;;  %v865_v10 = vld [vmem:[%s1366_s18 + $0x150] sm:$0xff]  ;;  %v867_v11 = vld [vmem:[%s1366_s18 + $0x158] sm:$0xff] }
 0x16d   : > { %846 = vst [vmem:[%s1448_s25 + $0x200] sm:$0xff] %v845_v0  ;;  %848 = vst [vmem:[%s1448_s25 + $0x208] sm:$0xff] %v847_v1  ;;  %v869_v12 = vld [vmem:[%s1366_s18 + $0x160] sm:$0xff]  ;;  %v871_v13 = vld [vmem:[%s1366_s18 + $0x168] sm:$0xff] }
 0x16e   : > { %v837_v60 = vld [vmem:[%s1366_s18 + $0xe0] sm:$0xff]  ;;  %850 = vst [vmem:[%s1448_s25 + $0x220] sm:$0xff] %v849_v2  ;;  %852 = vst [vmem:[%s1448_s25 + $0x228] sm:$0xff] %v851_v3  ;;  %v873_v14 = vld [vmem:[%s1366_s18 + $0x170] sm:$0xff] }
 0x16f   : > { %v839_v61 = vld [vmem:[%s1366_s18 + $0xe8] sm:$0xff]  ;;  %838 = vst [vmem:[%s1448_s25 + $0x1c0] sm:$0xff] %v837_v60  ;;  %854 = vst [vmem:[%s1448_s25 + $0x240] sm:$0xff] %v853_v4  ;;  %v875_v15 = vld [vmem:[%s1366_s18 + $0x178] sm:$0xff] }
 0x170   : > { %840 = vst [vmem:[%s1448_s25 + $0x1c8] sm:$0xff] %v839_v61  ;;  %v841_v62 = vld [vmem:[%s1366_s18 + $0xf0] sm:$0xff]  ;;  %856 = vst [vmem:[%s1448_s25 + $0x248] sm:$0xff] %v855_v5  ;;  %v877_v16 = vld [vmem:[%s1366_s18 + $0x180] sm:$0xff] }
 0x171   : > { %v843_v63 = vld [vmem:[%s1366_s18 + $0xf8] sm:$0xff]  ;;  %842 = vst [vmem:[%s1448_s25 + $0x1e0] sm:$0xff] %v841_v62  ;;  %858 = vst [vmem:[%s1448_s25 + $0x260] sm:$0xff] %v857_v6  ;;  %v879_v17 = vld [vmem:[%s1366_s18 + $0x188] sm:$0xff] }
 0x172   : > { %844 = vst [vmem:[%s1448_s25 + $0x1e8] sm:$0xff] %v843_v63  ;;  %860 = vst [vmem:[%s1448_s25 + $0x268] sm:$0xff] %v859_v7  ;;  %v881_v18 = vld [vmem:[%s1366_s18 + $0x190] sm:$0xff]  ;;  %v883_v19 = vld [vmem:[%s1366_s18 + $0x198] sm:$0xff] }
 0x173   : > { %862 = vst [vmem:[%s1448_s25 + $0x280] sm:$0xff] %v861_v8  ;;  %864 = vst [vmem:[%s1448_s25 + $0x288] sm:$0xff] %v863_v9  ;;  %v885_v20 = vld [vmem:[%s1366_s18 + $0x1a0] sm:$0xff]  ;;  %v887_v21 = vld [vmem:[%s1366_s18 + $0x1a8] sm:$0xff] }
 0x174   : > { %866 = vst [vmem:[%s1448_s25 + $0x2a0] sm:$0xff] %v865_v10  ;;  %868 = vst [vmem:[%s1448_s25 + $0x2a8] sm:$0xff] %v867_v11  ;;  %v889_v22 = vld [vmem:[%s1366_s18 + $0x1b0] sm:$0xff]  ;;  %v891_v23 = vld [vmem:[%s1366_s18 + $0x1b8] sm:$0xff] }
 0x175   : > { %870 = vst [vmem:[%s1448_s25 + $0x2c0] sm:$0xff] %v869_v12  ;;  %872 = vst [vmem:[%s1448_s25 + $0x2c8] sm:$0xff] %v871_v13  ;;  %v893_v24 = vld [vmem:[%s1366_s18 + $0x1c0] sm:$0xff]  ;;  %v895_v25 = vld [vmem:[%s1366_s18 + $0x1c8] sm:$0xff] }
 0x176   : > { %874 = vst [vmem:[%s1448_s25 + $0x2e0] sm:$0xff] %v873_v14  ;;  %876 = vst [vmem:[%s1448_s25 + $0x2e8] sm:$0xff] %v875_v15  ;;  %v897_v26 = vld [vmem:[%s1366_s18 + $0x1d0] sm:$0xff]  ;;  %v899_v27 = vld [vmem:[%s1366_s18 + $0x1d8] sm:$0xff] }
 0x177   : > { %878 = vst [vmem:[%s1448_s25 + $0x300] sm:$0xff] %v877_v16  ;;  %880 = vst [vmem:[%s1448_s25 + $0x308] sm:$0xff] %v879_v17  ;;  %v901_v28 = vld [vmem:[%s1366_s18 + $0x1e0] sm:$0xff]  ;;  %v903_v29 = vld [vmem:[%s1366_s18 + $0x1e8] sm:$0xff] }
 0x178   : > { %882 = vst [vmem:[%s1448_s25 + $0x320] sm:$0xff] %v881_v18  ;;  %884 = vst [vmem:[%s1448_s25 + $0x328] sm:$0xff] %v883_v19  ;;  %v905_v30 = vld [vmem:[%s1366_s18 + $0x1f0] sm:$0xff]  ;;  %v907_v31 = vld [vmem:[%s1366_s18 + $0x1f8] sm:$0xff] }
 0x179   : > { %886 = vst [vmem:[%s1448_s25 + $0x340] sm:$0xff] %v885_v20  ;;  %888 = vst [vmem:[%s1448_s25 + $0x348] sm:$0xff] %v887_v21 }
 0x17a   : > { %890 = vst [vmem:[%s1448_s25 + $0x360] sm:$0xff] %v889_v22  ;;  %892 = vst [vmem:[%s1448_s25 + $0x368] sm:$0xff] %v891_v23 }
 0x17b   : > { %894 = vst [vmem:[%s1448_s25 + $0x380] sm:$0xff] %v893_v24  ;;  %896 = vst [vmem:[%s1448_s25 + $0x388] sm:$0xff] %v895_v25 }
 0x17c   : > { %898 = vst [vmem:[%s1448_s25 + $0x3a0] sm:$0xff] %v897_v26  ;;  %900 = vst [vmem:[%s1448_s25 + $0x3a8] sm:$0xff] %v899_v27 }
 0x17d   : > { %902 = vst [vmem:[%s1448_s25 + $0x3c0] sm:$0xff] %v901_v28  ;;  %904 = vst [vmem:[%s1448_s25 + $0x3c8] sm:$0xff] %v903_v29 }
 0x17e   : > { %906 = vst [vmem:[%s1448_s25 + $0x3e0] sm:$0xff] %v905_v30  ;;  %908 = vst [vmem:[%s1448_s25 + $0x3e8] sm:$0xff] %v907_v31 }
 0x17f PF: > { %s12_s15 = sadd.s32 1, %s1245_s15   ;;  %s1594_s9 = smov %s1225_s10 }
 0x180   : > { %p9_p11 = scmp.ge.s32.totalorder %s12_s15, 6   ;;  %s1595_s10 = smov %s1319_s24 }
 0x181   : > { %s1596_s11 = smov %s1237_s13  ;;  %s1597_s12 = smov %s1241_s14 }
 0x182   : > { %s1598_s13 = smov %s1601_s16  ;;  %s1599_s14 = smov %s1605_s17 }
 0x183   :  { %11 = sbr.rel (!%p9_p11) target bundleno = 4 (0x4), region = 84 }

// kernel: gcn_e_forward.5
= control target key start
LH: loop header
LB: loop body
LE: loop exit
PB: predicated region body
PF: predicated region fallthrough
CT: control target
= control target key end

     0   :  { %s2389_s12 = smov 0   ;;  %s2638_s0 = inlined_call_operand.vmem [shape: bf16[512,512], index: 0, kind: input, shape index: {}]   ;;  %s2639_s1 = inlined_call_operand.vmem [shape: bf16[512,128], index: 1, kind: input, shape index: {}]   ;;  %s2640_s2 = inlined_call_operand.vmem [shape: bf16[128,128], index: 2, kind: input, shape index: {}]   ;;  %s2641_s3 = inlined_call_operand.vmem [shape: bf16[512,128], index: 3, kind: output, shape index: {}]  }
   0x1 LB: > { %s1629_s13 = sadd.s32 4294967295, %s2367_s12   ;;  %p1633_p0 = scmp.ge.s32.totalorder %s2367_s12, 1  ;;  %s2367_s12 = sphi %s2389_s12, %s13_s12  }
   0x2   : > { %p139_p1 = scmp.lt.s32.totalorder %s2367_s12, 3 }
   0x4   : > { %p140_p2 = pnand %p1633_p0, %p139_p1 }
   0x5   : > { %v2225_v0 = vld [vmem:[%s2639_s1 + $0x40] sm:$0xff] (!%p140_p2)   ;;  %s1634_s16 = sshll.u32 (!%p140_p2), %s1629_s13, 5  ;;  %v2227_v2 = vld [vmem:[%s2639_s1 + $0x48] sm:$0xff] (!%p140_p2)   ;;  %v2229_v4 = vld [vmem:[%s2639_s1 + $0x50] sm:$0xff] (!%p140_p2)  }
   0x6   : > { %143 = sbr.rel (%p140_p2) target bundleno = 631 (0x277), region = 32  ;;  %v2226_v1 = vld [vmem:[%s2639_s1] sm:$0xff] (!%p140_p2)   ;;  %2201 = vmatprep.subr.bf16.mxu1 (!%p140_p2), %v2225_v0  ;;  %1905 = vmatprep.subr.bf16.mxu0 (!%p140_p2), %v2225_v0  ;;  %v2228_v3 = vld [vmem:[%s2639_s1 + $0x8] sm:$0xff] (!%p140_p2)   ;;  %p165_p3 = scmp.lt.s32.totalorder (!%p140_p2), %s1634_s16, 63  ;;  %v2230_v5 = vld [vmem:[%s2639_s1 + $0x10] sm:$0xff] (!%p140_p2)  }
   0x7   : > { %2209 = vmatpush3.bf16.msra.mxu1 (!%p140_p2), %v2226_v1  ;;  %1906 = vmatpush3.bf16.msra.mxu0 (!%p140_p2), %v2226_v1  ;;  %v2231_v6 = vld [vmem:[%s2639_s1 + $0x58] sm:$0xff] (!%p140_p2)   ;;  %v2233_v8 = vld [vmem:[%s2639_s1 + $0x60] sm:$0xff] (!%p140_p2)   ;;  %v2235_v10 = vld [vmem:[%s2639_s1 + $0x68] sm:$0xff] (!%p140_p2)  }
   0x8   : > { %2202 = vmatprep.subr.bf16.mxu1 (!%p140_p2), %v2227_v2  ;;  %1907 = vmatprep.subr.bf16.mxu0 (!%p140_p2), %v2227_v2  ;;  %v2232_v7 = vld [vmem:[%s2639_s1 + $0x18] sm:$0xff] (!%p140_p2)   ;;  %v2234_v9 = vld [vmem:[%s2639_s1 + $0x20] sm:$0xff] (!%p140_p2)   ;;  %v2236_v12 = vld [vmem:[%s2639_s1 + $0x28] sm:$0xff] (!%p140_p2)  }
   0x9   : > { %v2237_v13 = vld [vmem:[%s2639_s1 + $0x70] sm:$0xff] (!%p140_p2)   ;;  %v2239_v15 = vld [vmem:[%s2639_s1 + $0x78] sm:$0xff] (!%p140_p2)   ;;  %v2244_v17 = vld [vmem:[%s2639_s1 + $0xc0] sm:$0xff] (!%p140_p2)  }
   0xa   : > { %v2238_v14 = vld [vmem:[%s2639_s1 + $0x30] sm:$0xff] (!%p140_p2)   ;;  %v2240_v16 = vld [vmem:[%s2639_s1 + $0x38] sm:$0xff] (!%p140_p2)   ;;  %v2245_v19 = vld [vmem:[%s2639_s1 + $0x80] sm:$0xff] (!%p140_p2)  }
   0xb   : > { %2210 = vmatpush3.bf16.msra.mxu1 (!%p140_p2), %v2228_v3  ;;  %1908 = vmatpush3.bf16.msra.mxu0 (!%p140_p2), %v2228_v3  ;;  %v2246_v21 = vld [vmem:[%s2639_s1 + $0xc8] sm:$0xff] (!%p140_p2)   ;;  %v2251_v24 = vld [vmem:[%s2639_s1 + $0xd0] sm:$0xff] (!%p140_p2)   ;;  %v2253_v28 = vld [vmem:[%s2639_s1 + $0xd8] sm:$0xff] (!%p140_p2)  }
   0xc   : > { %2203 = vmatprep.subr.bf16.mxu1 (!%p140_p2), %v2229_v4  ;;  %1909 = vmatprep.subr.bf16.mxu0 (!%p140_p2), %v2229_v4  ;;  %v2247_v22 = vld [vmem:[%s2639_s1 + $0x88] sm:$0xff] (!%p140_p2)   ;;  %v2252_v25 = vld [vmem:[%s2639_s1 + $0x90] sm:$0xff] (!%p140_p2)   ;;  %v2254_v31 = vld [vmem:[%s2639_s1 + $0x98] sm:$0xff] (!%p140_p2)  }
   0xd   : > { %s2643_s16 = smov (!%p165_p3, %s1634_s16), 63  ;;  %v2258_v33 = vld [vmem:[%s2639_s1 + $0xe0] sm:$0xff]   ;;  %v2260_v38 = vld [vmem:[%s2639_s1 + $0xe8] sm:$0xff]   ;;  %v2265_v41 = vld [vmem:[%s2639_s1 + $0xf0] sm:$0xff]  }
   0xe   : > { %s1777_s4 = sshll.u32 %s2643_s16, 4  ;;  %v2259_v36 = vld [vmem:[%s2639_s1 + $0xa0] sm:$0xff]   ;;  %v2261_v39 = vld [vmem:[%s2639_s1 + $0xa8] sm:$0xff]   ;;  %v2266_v44 = vld [vmem:[%s2639_s1 + $0xb0] sm:$0xff]  }
   0xf   : > { %2211 = vmatpush3.bf16.msra.mxu1 %v2230_v5  ;;  %1910 = vmatpush3.bf16.msra.mxu0 %v2230_v5  ;;  %s2430_s9 = scalar_lea.vmem %s2638_s0, %s1777_s4  ;;  %v2267_v46 = vld [vmem:[%s2639_s1 + $0xf8] sm:$0xff]  }
  0x10   : > { %2204 = vmatprep.subr.bf16.mxu1 %v2231_v6  ;;  %1911 = vmatprep.subr.bf16.mxu0 %v2231_v6  ;;  %v2243_v11 = vld [vmem:[%s2430_s9 + $0x184] ss:$16 sps:$4 sm:$0xff]   ;;  %v2241_v18 = vld [vmem:[%s2430_s9 + $0x180] ss:$16 sps:$4 sm:$0xff]   ;;  %v2274_v45 = vld [vmem:[%s2430_s9 + $0xc] ss:$16 sps:$4 sm:$0xff]  }
  0x11   : > { %946 = vmatprep.mubr.bf16.mxu1 %v2243_v11  ;;  %v2248_v20 = vld [vmem:[%s2430_s9 + $0x1a4] ss:$16 sps:$4 sm:$0xff]   ;;  %v2250_v23 = vld [vmem:[%s2430_s9 + $0x1a0] ss:$16 sps:$4 sm:$0xff]   ;;  %v2268_v47 = vld [vmem:[%s2639_s1 + $0xb8] sm:$0xff]  }
  0x12   : > { %v2269_v26 = vld [vmem:[%s2430_s9] ss:$16 sps:$4 sm:$0xff]   ;;  %v2271_v27 = vld [vmem:[%s2430_s9 + $0x4] ss:$16 sps:$4 sm:$0xff]   ;;  %v2272_v48 = vld [vmem:[%s2430_s9 + $0x8] ss:$16 sps:$4 sm:$0xff]  }
  0x13   : > { %2212 = vmatpush3.bf16.msra.mxu1 %v2232_v7  ;;  %1912 = vmatpush3.bf16.msra.mxu0 %v2232_v7  ;;  %v2255_v29 = vld [vmem:[%s2430_s9 + $0x1c4] ss:$16 sps:$4 sm:$0xff]   ;;  %v2257_v32 = vld [vmem:[%s2430_s9 + $0x1c0] ss:$16 sps:$4 sm:$0xff]   ;;  %v2277_v51 = vld [vmem:[%s2430_s9 + $0x2c] ss:$16 sps:$4 sm:$0xff]  }
  0x14   : > { %2205 = vmatprep.subr.bf16.mxu1 %v2233_v8  ;;  %1913 = vmatprep.subr.bf16.mxu0 %v2233_v8  ;;  %v2275_v30 = vld [vmem:[%s2430_s9 + $0x24] ss:$16 sps:$4 sm:$0xff]   ;;  %v2279_v34 = vld [vmem:[%s2430_s9 + $0x20] ss:$16 sps:$4 sm:$0xff]   ;;  %v2280_v53 = vld [vmem:[%s2430_s9 + $0x28] ss:$16 sps:$4 sm:$0xff]  }
  0x15   : > { %850 = vmatprep.mubr.bf16.mxu0 %v2271_v27  ;;  %v2281_v35 = vld [vmem:[%s2430_s9 + $0x44] ss:$16 sps:$4 sm:$0xff]   ;;  %v2264_v40 = vld [vmem:[%s2430_s9 + $0x1e0] ss:$16 sps:$4 sm:$0xff]   ;;  %v2283_v55 = vld [vmem:[%s2430_s9 + $0x4c] ss:$16 sps:$4 sm:$0xff]  }
  0x16   : > { %v2262_v37 = vld [vmem:[%s2430_s9 + $0x1e4] ss:$16 sps:$4 sm:$0xff]   ;;  %v2285_v42 = vld [vmem:[%s2430_s9 + $0x40] ss:$16 sps:$4 sm:$0xff]   ;;  %v2286_v57 = vld [vmem:[%s2430_s9 + $0x48] ss:$16 sps:$4 sm:$0xff]  }
  0x17   : > { %2213 = vmatpush3.bf16.msra.mxu1 %v2234_v9  ;;  %1914 = vmatpush3.bf16.msra.mxu0 %v2234_v9  ;;  %v2287_v43 = vld [vmem:[%s2430_s9 + $0x64] ss:$16 sps:$4 sm:$0xff]   ;;  %v2291_v49 = vld [vmem:[%s2430_s9 + $0x60] ss:$16 sps:$4 sm:$0xff]   ;;  %v2289_v59 = vld [vmem:[%s2430_s9 + $0x6c] ss:$16 sps:$4 sm:$0xff]  }
  0x18   : > { %2206 = vmatprep.subr.bf16.mxu1 %v2235_v10  ;;  %1915 = vmatprep.subr.bf16.mxu0 %v2235_v10  ;;  %v2293_v50 = vld [vmem:[%s2430_s9 + $0x84] ss:$16 sps:$4 sm:$0xff]   ;;  %v2297_v52 = vld [vmem:[%s2430_s9 + $0x80] ss:$16 sps:$4 sm:$0xff]   ;;  %v2292_v61 = vld [vmem:[%s2430_s9 + $0x68] ss:$16 sps:$4 sm:$0xff]  }
  0x19   : > { %v2299_v54 = vld [vmem:[%s2430_s9 + $0xa4] ss:$16 sps:$4 sm:$0xff]   ;;  %v2303_v56 = vld [vmem:[%s2430_s9 + $0xa0] ss:$16 sps:$4 sm:$0xff]   ;;  %v2295_v63 = vld [vmem:[%s2430_s9 + $0x8c] ss:$16 sps:$4 sm:$0xff]  }
  0x1a   : > { %v2305_v58 = vld [vmem:[%s2430_s9 + $0xc4] ss:$16 sps:$4 sm:$0xff]   ;;  %v2309_v60 = vld [vmem:[%s2430_s9 + $0xc0] ss:$16 sps:$4 sm:$0xff]   ;;  %v2298_v1 = vld [vmem:[%s2430_s9 + $0x88] ss:$16 sps:$4 sm:$0xff]  }
  0x1b   : > { %2214 = vmatpush3.bf16.msra.mxu1 %v2236_v12  ;;  %1916 = vmatpush3.bf16.msra.mxu0 %v2236_v12  ;;  %v2311_v62 = vld [vmem:[%s2430_s9 + $0xe4] ss:$16 sps:$4 sm:$0xff]   ;;  %v2315_v0 = vld [vmem:[%s2430_s9 + $0xe0] ss:$16 sps:$4 sm:$0xff]   ;;  %v2301_v3 = vld [vmem:[%s2430_s9 + $0xac] ss:$16 sps:$4 sm:$0xff]  }
  0x1c   : > { %2207 = vmatprep.subr.bf16.mxu1 %v2237_v13  ;;  %1917 = vmatprep.subr.bf16.mxu0 %v2237_v13  ;;  %v2317_v2 = vld [vmem:[%s2430_s9 + $0x104] ss:$16 sps:$4 sm:$0xff]   ;;  %v2321_v4 = vld [vmem:[%s2430_s9 + $0x100] ss:$16 sps:$4 sm:$0xff]   ;;  %v2304_v5 = vld [vmem:[%s2430_s9 + $0xa8] ss:$16 sps:$4 sm:$0xff]  }
  0x1d   : > { %v2323_v6 = vld [vmem:[%s2430_s9 + $0x124] ss:$16 sps:$4 sm:$0xff]   ;;  %v2307_v7 = vld [vmem:[%s2430_s9 + $0xcc] ss:$16 sps:$4 sm:$0xff]   ;;  %v2327_v8 = vld [vmem:[%s2430_s9 + $0x120] ss:$16 sps:$4 sm:$0xff]  }
  0x1e   : > { %v2310_v9 = vld [vmem:[%s2430_s9 + $0xc8] ss:$16 sps:$4 sm:$0xff]   ;;  %v2329_v10 = vld [vmem:[%s2430_s9 + $0x144] ss:$16 sps:$4 sm:$0xff]   ;;  %v2313_v11 = vld [vmem:[%s2430_s9 + $0xec] ss:$16 sps:$4 sm:$0xff]  }
  0x1f   : > { %2215 = vmatpush3.bf16.msra.mxu1 %v2238_v14  ;;  %1918 = vmatpush3.bf16.msra.mxu0 %v2238_v14  ;;  %v2333_v12 = vld [vmem:[%s2430_s9 + $0x140] ss:$16 sps:$4 sm:$0xff]   ;;  %v2316_v13 = vld [vmem:[%s2430_s9 + $0xe8] ss:$16 sps:$4 sm:$0xff]   ;;  %v2335_v14 = vld [vmem:[%s2430_s9 + $0x164] ss:$16 sps:$4 sm:$0xff]  }
  0x20   : > { %2208 = vmatprep.subr.bf16.mxu1 %v2239_v15  ;;  %1919 = vmatprep.subr.bf16.mxu0 %v2239_v15  ;;  %v2319_v15 = vld [vmem:[%s2430_s9 + $0x10c] ss:$16 sps:$4 sm:$0xff]   ;;  %v2357_v27 = vld [vmem:[%s2640_s2 + $0x20] sm:$0xff]  }
  0x23   : > { %2216 = vmatpush3.bf16.msra.mxu1 %v2240_v16  ;;  %1920 = vmatpush3.bf16.msra.mxu0 %v2240_v16  ;;  %v2339_v16 = vld [vmem:[%s2430_s9 + $0x160] ss:$16 sps:$4 sm:$0xff]  }
  0x24   : > { %2017 = vmatprep.subr.bf16.mxu1 %v2244_v17  ;;  %v2322_v17 = vld [vmem:[%s2430_s9 + $0x108] ss:$16 sps:$4 sm:$0xff]  }
  0x26   : > { %947 = vmatmul.mubr.bf16.vlgmr.msra.gmra.mrb[0].mxu1 %v2241_v18  ;;  %851 = vmatmul.mubr.bf16.vlgmr.msra.gmra.mrb[0].mxu0 %v2269_v26  ;;  %v2325_v18 = vld [vmem:[%s2430_s9 + $0x12c] ss:$16 sps:$4 sm:$0xff]  }
  0x27   : > { %2018 = vmatpush3.bf16.msra.mxu1 %v2245_v19  ;;  %954 = vmatprep.mubr.bf16.mxu1 %v2248_v20  ;;  %v2353_v19 = vld [vmem:[%s2640_s2] sm:$0xff]   ;;  %v2328_v20 = vld [vmem:[%s2430_s9 + $0x128] ss:$16 sps:$4 sm:$0xff]  }
  0x28   : > { %2019 = vmatprep.subr.bf16.mxu1 %v2246_v21  ;;  %858 = vmatprep.mubr.bf16.mxu0 %v2275_v30  ;;  %v2331_v21 = vld [vmem:[%s2430_s9 + $0x14c] ss:$16 sps:$4 sm:$0xff]  }
  0x29   : > { %2153 = vmatprep.subr.bf16.mxu0 %v2353_v19  ;;  %v2356_v26 = vld [vmem:[%s2640_s2 + $0x18] sm:$0xff]   ;;  %v2358_v30 = vld [vmem:[%s2640_s2 + $0x28] sm:$0xff]  }
  0x2a   : > { %2154 = vmatpush3.bf16.msra.mxu0 %v2353_v19 }
  0x2b   : > { %2020 = vmatpush3.bf16.msra.mxu1 %v2247_v22  ;;  %v2354_v22 = vld [vmem:[%s2640_s2 + $0x8] sm:$0xff]  }
  0x2c   : > { %2021 = vmatprep.subr.bf16.mxu1 %v2251_v24  ;;  %2155 = vmatprep.subr.bf16.mxu0 %v2354_v22  ;;  %v2334_v24 = vld [vmem:[%s2430_s9 + $0x148] ss:$16 sps:$4 sm:$0xff]  }
  0x2e   : > { %955 = vmatmul.mubr.bf16.gmra.mrb[4].mxu1 %v2250_v23  ;;  %859 = vmatmul.mubr.bf16.gmra.mrb[4].mxu0 %v2279_v34  ;;  %v2355_v23 = vld [vmem:[%s2640_s2 + $0x10] sm:$0xff]   ;;  %v2360_v34 = vld [vmem:[%s2640_s2 + $0x38] sm:$0xff]  }
  0x2f   : > { %2022 = vmatpush3.bf16.msra.mxu1 %v2252_v25  ;;  %962 = vmatprep.mubr.bf16.mxu1 %v2255_v29  ;;  %v2337_v25 = vld [vmem:[%s2430_s9 + $0x16c] ss:$16 sps:$4 sm:$0xff]  }
  0x30   : > { %2023 = vmatprep.subr.bf16.mxu1 %v2253_v28  ;;  %866 = vmatprep.mubr.bf16.mxu0 %v2281_v35  ;;  %v2340_v28 = vld [vmem:[%s2430_s9 + $0x168] ss:$16 sps:$4 sm:$0xff]   ;;  %v2341_v29 = vld [vmem:[%s2430_s9 + $0x18c] ss:$16 sps:$4 sm:$0xff]  }
  0x31   : > { %2156 = vmatpush3.bf16.msra.mxu0 %v2354_v22  ;;  %v2346_v35 = vld [vmem:[%s2430_s9 + $0x1a8] ss:$16 sps:$4 sm:$0xff]  }
  0x32   : > { %2157 = vmatprep.subr.bf16.mxu0 %v2355_v23 }
  0x33   : > { %2024 = vmatpush3.bf16.msra.mxu1 %v2254_v31  ;;  %v2359_v31 = vld [vmem:[%s2640_s2 + $0x30] sm:$0xff]  }
  0x34   : > { %2025 = vmatprep.subr.bf16.mxu1 %v2258_v33  ;;  %v2344_v33 = vld [vmem:[%s2430_s9 + $0x1ac] ss:$16 sps:$4 sm:$0xff]  }
  0x35   : > { %2158 = vmatpush3.bf16.msra.mxu0 %v2355_v23 }
  0x36   : > { %963 = vmatmul.mubr.bf16.gmra.mrb[8].mxu1 %v2257_v32  ;;  %867 = vmatmul.mubr.bf16.gmra.mrb[8].mxu0 %v2285_v42  ;;  %v2343_v32 = vld [vmem:[%s2430_s9 + $0x188] ss:$16 sps:$4 sm:$0xff]  }
  0x37   : > { %2026 = vmatpush3.bf16.msra.mxu1 %v2259_v36  ;;  %970 = vmatprep.mubr.bf16.mxu1 %v2262_v37  ;;  %v2347_v36 = vld [vmem:[%s2430_s9 + $0x1cc] ss:$16 sps:$4 sm:$0xff]   ;;  %v2349_v37 = vld [vmem:[%s2430_s9 + $0x1c8] ss:$16 sps:$4 sm:$0xff]  }
  0x38   : > { %2027 = vmatprep.subr.bf16.mxu1 %v2260_v38  ;;  %874 = vmatprep.mubr.bf16.mxu0 %v2287_v43  ;;  %v2350_v38 = vld [vmem:[%s2430_s9 + $0x1ec] ss:$16 sps:$4 sm:$0xff]  }
  0x39   : > { %2159 = vmatprep.subr.bf16.mxu0 %v2356_v26 }
  0x3a   : > { %2160 = vmatpush3.bf16.msra.mxu0 %v2356_v26 }
  0x3b   : > { %2028 = vmatpush3.bf16.msra.mxu1 %v2261_v39  ;;  %2161 = vmatprep.subr.bf16.mxu0 %v2357_v27  ;;  %v2352_v39 = vld [vmem:[%s2430_s9 + $0x1e8] ss:$16 sps:$4 sm:$0xff]   ;;  %s1638_s9 = sshll.u32 %s2643_s16, 2 }
  0x3c   : > { %2029 = vmatprep.subr.bf16.mxu1 %v2265_v41  ;;  %s2617_s28 = scalar_lea.vmem %s2641_s3, %s1638_s9 }
  0x3e   : > { %971 = vmatmul.mubr.bf16.gmra.mrb[12].mxu1 %v2264_v40  ;;  %875 = vmatmul.mubr.bf16.gmra.mrb[12].mxu0 %v2291_v49 }
  0x3f   : > { %2030 = vmatpush3.bf16.msra.mxu1 %v2266_v44  ;;  %1011 = vmatprep.mubr.bf16.mxu1 %v2274_v45 }
  0x40   : > { %2031 = vmatprep.subr.bf16.mxu1 %v2267_v46  ;;  %882 = vmatprep.mubr.bf16.mxu0 %v2293_v50 }
  0x41   : > { %2162 = vmatpush3.bf16.msra.mxu0 %v2357_v27 }
  0x42   : > { %2163 = vmatprep.subr.bf16.mxu0 %v2358_v30 }
  0x43   : > { %2032 = vmatpush3.bf16.msra.mxu1 %v2268_v47 }
  0x45   : > { %2164 = vmatpush3.bf16.msra.mxu0 %v2358_v30 }
  0x46   : > { %1012 = vmatmul.mubr.bf16.vlgmr.msra.gmra.mrb[16].mxu1 %v2272_v48  ;;  %883 = vmatmul.mubr.bf16.gmra.mrb[16].mxu0 %v2297_v52 }
  0x47   : > { %1019 = vmatprep.mubr.bf16.mxu1 %v2277_v51  ;;  %890 = vmatprep.mubr.bf16.mxu0 %v2299_v54 }
  0x48   : > { %2165 = vmatprep.subr.bf16.mxu0 %v2359_v31 }
  0x49   : > { %2166 = vmatpush3.bf16.msra.mxu0 %v2359_v31 }
  0x4a   : > { %2167 = vmatprep.subr.bf16.mxu0 %v2360_v34 }
  0x4d   : > { %2168 = vmatpush3.bf16.msra.mxu0 %v2360_v34 }
  0x4e   : > { %1020 = vmatmul.mubr.bf16.gmra.mrb[20].mxu1 %v2280_v53  ;;  %891 = vmatmul.mubr.bf16.gmra.mrb[20].mxu0 %v2303_v56 }
  0x4f   : > { %1027 = vmatprep.mubr.bf16.mxu1 %v2283_v55  ;;  %898 = vmatprep.mubr.bf16.mxu0 %v2305_v58 }
  0x56   : > { %1028 = vmatmul.mubr.bf16.gmra.mrb[24].mxu1 %v2286_v57  ;;  %899 = vmatmul.mubr.bf16.gmra.mrb[24].mxu0 %v2309_v60 }
  0x57   : > { %1035 = vmatprep.mubr.bf16.mxu1 %v2289_v59  ;;  %906 = vmatprep.mubr.bf16.mxu0 %v2311_v62 }
  0x5e   : > { %1036 = vmatmul.mubr.bf16.gmra.mrb[28].mxu1 %v2292_v61  ;;  %907 = vmatmul.mubr.bf16.gmra.mrb[28].mxu0 %v2315_v0 }
  0x5f   : > { %1043 = vmatprep.mubr.bf16.mxu1 %v2295_v63  ;;  %914 = vmatprep.mubr.bf16.mxu0 %v2317_v2 }
  0x66   : > { %1044 = vmatmul.mubr.bf16.gmra.mrb[32].mxu1 %v2298_v1  ;;  %915 = vmatmul.mubr.bf16.gmra.mrb[32].mxu0 %v2321_v4 }
  0x67   : > { %1051 = vmatprep.mubr.bf16.mxu1 %v2301_v3  ;;  %922 = vmatprep.mubr.bf16.mxu0 %v2323_v6 }
  0x6e   : > { %1052 = vmatmul.mubr.bf16.gmra.mrb[36].mxu1 %v2304_v5  ;;  %923 = vmatmul.mubr.bf16.gmra.mrb[36].mxu0 %v2327_v8 }
  0x6f   : > { %1059 = vmatprep.mubr.bf16.mxu1 %v2307_v7  ;;  %930 = vmatprep.mubr.bf16.mxu0 %v2329_v10 }
  0x76   : > { %1060 = vmatmul.mubr.bf16.gmra.mrb[40].mxu1 %v2310_v9  ;;  %931 = vmatmul.mubr.bf16.gmra.mrb[40].mxu0 %v2333_v12 }
  0x77   : > { %1067 = vmatprep.mubr.bf16.mxu1 %v2313_v11  ;;  %938 = vmatprep.mubr.bf16.mxu0 %v2335_v14 }
  0x7e   : > { %1068 = vmatmul.mubr.bf16.gmra.mrb[44].mxu1 %v2316_v13  ;;  %939 = vmatmul.mubr.bf16.gmra.mrb[44].mxu0 %v2339_v16 }
  0x7f   : > { %1075 = vmatprep.mubr.bf16.mxu1 %v2319_v15 }
  0x86   : > { %1076 = vmatmul.mubr.bf16.gmra.mrb[48].mxu1 %v2322_v17 }
  0x87   : > { %1083 = vmatprep.mubr.bf16.mxu1 %v2325_v18 }
  0x8e   : > { %1084 = vmatmul.mubr.bf16.gmra.mrb[52].mxu1 %v2328_v20 }
  0x8f   : > { %1091 = vmatprep.mubr.bf16.mxu1 %v2331_v21 }
  0x96   : > { %1092 = vmatmul.mubr.bf16.gmra.mrb[56].mxu1 %v2334_v24 }
  0x97   : > { %1099 = vmatprep.mubr.bf16.mxu1 %v2337_v25 }
  0x9e   : > { %1100 = vmatmul.mubr.bf16.gmra.mrb[60].mxu1 %v2340_v28 }
  0x9f   : > { %1107 = vmatprep.mubr.bf16.mxu1 %v2341_v29 }
  0xa6   : > { %1108 = vmatmul.mubr.bf16.gmra.mrb[64].mxu1 %v2343_v32 }
  0xa7   : > { %1115 = vmatprep.mubr.bf16.mxu1 %v2344_v33 }
  0xae   : > { %1116 = vmatmul.mubr.bf16.gmra.mrb[68].mxu1 %v2346_v35 }
  0xaf   : > { %1123 = vmatprep.mubr.bf16.mxu1 %v2347_v36 }
  0xb6   : > { %1124 = vmatmul.mubr.bf16.gmra.mrb[72].mxu1 %v2349_v37 }
  0xb7   : > { %1131 = vmatprep.mubr.bf16.mxu1 %v2350_v38 }
  0xbe   : > { %1132 = vmatmul.mubr.bf16.gmra.mrb[76].mxu1 %v2352_v39 }
  0xf9   : > { %v1993_v40 = vpop.f32.mrb[0].mxu1  ;;  %v1921_v46 = vpop.f32.mrb[0].mxu0 }
  0xfa   : > { %v1994_v41 = vpop.f32.mrb[1].mxu1  ;;  %v1922_v48 = vpop.f32.mrb[1].mxu0 }
  0xfb   : > { %v2589_v42 = vadd.f32 %v1994_v41, %v1993_v40  ;;  %v1996_v43 = vpop.f32.mrb[2].mxu1  ;;  %v1923_v50 = vadd.f32 %v1922_v48, %v1921_v46  ;;  %v1924_v51 = vpop.f32.mrb[2].mxu0 }
  0xfc   : > { %v1997_v44 = vpop.f32.mrb[3].mxu1  ;;  %v1925_v54 = vpop.f32.mrb[3].mxu0 }
  0xfd   : > { %v2591_v45 = vadd.f32 %v1997_v44, %v1996_v43  ;;  %v1926_v56 = vadd.f32 %v1925_v54, %v1924_v51 }
 0x101   : > { %v1999_v47 = vpop.f32.mrb[4].mxu1  ;;  %v1927_v58 = vpop.f32.mrb[4].mxu0 }
 0x102   : > { %v2000_v49 = vpop.f32.mrb[5].mxu1  ;;  %v1928_v60 = vpop.f32.mrb[5].mxu0 }
 0x103   : > { %v2593_v52 = vadd.f32 %v2000_v49, %v1999_v47  ;;  %v2002_v53 = vpop.f32.mrb[6].mxu1  ;;  %v1929_v62 = vadd.f32 %v1928_v60, %v1927_v58  ;;  %v1930_v63 = vpop.f32.mrb[6].mxu0 }
 0x104   : > { %v2003_v55 = vpop.f32.mrb[7].mxu1  ;;  %v1931_v2 = vpop.f32.mrb[7].mxu0 }
 0x105   : > { %v2595_v57 = vadd.f32 %v2003_v55, %v2002_v53  ;;  %v1932_v4 = vadd.f32 %v1931_v2, %v1930_v63 }
 0x109   : > { %v2005_v59 = vpop.f32.mrb[8].mxu1  ;;  %v1933_v6 = vpop.f32.mrb[8].mxu0 }
 0x10a   : > { %v2006_v61 = vpop.f32.mrb[9].mxu1  ;;  %v1934_v8 = vpop.f32.mrb[9].mxu0 }
 0x10b   : > { %v2597_v0 = vadd.f32 %v2006_v61, %v2005_v59  ;;  %v2008_v1 = vpop.f32.mrb[10].mxu1  ;;  %v1935_v10 = vadd.f32 %v1934_v8, %v1933_v6  ;;  %v1936_v11 = vpop.f32.mrb[10].mxu0 }
 0x10c   : > { %v2009_v3 = vpop.f32.mrb[11].mxu1  ;;  %v1937_v14 = vpop.f32.mrb[11].mxu0 }
 0x10d   : > { %v2599_v5 = vadd.f32 %v2009_v3, %v2008_v1  ;;  %v1938_v16 = vadd.f32 %v1937_v14, %v1936_v11 }
 0x111   : > { %v2011_v7 = vpop.f32.mrb[12].mxu1  ;;  %v1939_v18 = vpop.f32.mrb[12].mxu0 }
 0x112   : > { %v2012_v9 = vpop.f32.mrb[13].mxu1  ;;  %v1940_v20 = vpop.f32.mrb[13].mxu0 }
 0x113   : > { %v2601_v12 = vadd.f32 %v2012_v9, %v2011_v7  ;;  %v2014_v13 = vpop.f32.mrb[14].mxu1  ;;  %v1941_v22 = vadd.f32 %v1940_v20, %v1939_v18  ;;  %v1942_v23 = vpop.f32.mrb[14].mxu0 }
 0x114   : > { %v2015_v15 = vpop.f32.mrb[15].mxu1  ;;  %v1943_v26 = vpop.f32.mrb[15].mxu0 }
 0x115   : > { %v2603_v17 = vadd.f32 %v2015_v15, %v2014_v13  ;;  %v1944_v28 = vadd.f32 %v1943_v26, %v1942_v23 }
 0x119   : > { %v2033_v19 = vpop.f32.mrb[16].mxu1  ;;  %v1945_v32 = vpop.f32.mrb[16].mxu0 }
 0x11a   : > { %v2034_v21 = vpop.f32.mrb[17].mxu1  ;;  %v1946_v35 = vpop.f32.mrb[17].mxu0 }
 0x11b   : > { %v2035_v24 = vadd.f32 %v2034_v21, %v2033_v19  ;;  %v2036_v25 = vpop.f32.mrb[18].mxu1  ;;  %v1947_v37 = vadd.f32 %v1946_v35, %v1945_v32  ;;  %v1948_v38 = vpop.f32.mrb[18].mxu0 }
 0x11c   : > { %v2037_v27 = vpop.f32.mrb[19].mxu1  ;;  %v1949_v41 = vpop.f32.mrb[19].mxu0 }
 0x11d   : > { %v1014_v29 = vadd.f32 %v2035_v24, %v1923_v50  ;;  %v2038_v30 = vadd.f32 %v2037_v27, %v2036_v25  ;;  %v1950_v44 = vadd.f32 %v1949_v41, %v1948_v38 }
 0x11f   : > { %v1017_v31 = vadd.f32 %v2038_v30, %v1926_v56 }
 0x121   : > { %v2039_v33 = vpop.f32.mrb[20].mxu1  ;;  %v1140_v34 = vpack.c.bf16 %v1017_v31, %v1014_v29  ;;  %v1951_v49 = vpop.f32.mrb[20].mxu0 }
 0x122   : > { %v2040_v36 = vpop.f32.mrb[21].mxu1  ;;  %v1952_v53 = vpop.f32.mrb[21].mxu0 }
 0x123   : > { %v2041_v39 = vadd.f32 %v2040_v36, %v2039_v33  ;;  %v2042_v40 = vpop.f32.mrb[22].mxu1  ;;  %2169 = vmatprep.mubr.bf16.mxu0 %v1140_v34  ;;  %v1953_v55 = vadd.f32 %v1952_v53, %v1951_v49  ;;  %v1954_v56 = vpop.f32.mrb[22].mxu0 }
 0x124   : > { %v2043_v43 = vpop.f32.mrb[23].mxu1  ;;  %v1955_v60 = vpop.f32.mrb[23].mxu0 }
 0x125   : > { %v1022_v46 = vadd.f32 %v2041_v39, %v1929_v62  ;;  %v2044_v47 = vadd.f32 %v2043_v43, %v2042_v40  ;;  %v1956_v63 = vadd.f32 %v1955_v60, %v1954_v56 }
 0x127   : > { %v1025_v48 = vadd.f32 %v2044_v47, %v1932_v4 }
 0x129   : > { %v1141_v50 = vpack.c.bf16 %v1025_v48, %v1022_v46  ;;  %v2045_v51 = vpop.f32.mrb[24].mxu1  ;;  %v1957_v6 = vpop.f32.mrb[24].mxu0 }
 0x12a   : > { %v2046_v54 = vpop.f32.mrb[25].mxu1  ;;  %v1958_v4 = vpop.f32.mrb[25].mxu0 }
 0x12b   : > { %v2047_v58 = vadd.f32 %v2046_v54, %v2045_v51  ;;  %v2048_v59 = vpop.f32.mrb[26].mxu1  ;;  %2170 = vmatmul.mubr.bf16.vlgmr.msra.gmra.mrb[48].mxu0 %v1141_v50  ;;  %v1959_v9 = vadd.f32 %v1958_v4, %v1957_v6  ;;  %v1960_v11 = vpop.f32.mrb[26].mxu0 }
 0x12c   : > { %v2049_v61 = vpop.f32.mrb[27].mxu1  ;;  %v1961_v15 = vpop.f32.mrb[27].mxu0 }
 0x12d   : > { %v1030_v1 = vadd.f32 %v2047_v58, %v1935_v10  ;;  %v2050_v2 = vadd.f32 %v2049_v61, %v2048_v59  ;;  %v1962_v19 = vadd.f32 %v1961_v15, %v1960_v11 }
 0x12f   : > { %v1033_v3 = vadd.f32 %v2050_v2, %v1938_v16 }
 0x131   : > { %v2051_v62 = vpop.f32.mrb[28].mxu1  ;;  %v1142_v7 = vpack.c.bf16 %v1033_v3, %v1030_v1  ;;  %v1963_v24 = vpop.f32.mrb[28].mxu0 }
 0x132   : > { %v2052_v8 = vpop.f32.mrb[29].mxu1  ;;  %v1964_v16 = vpop.f32.mrb[29].mxu0 }
 0x133   : > { %v2053_v13 = vadd.f32 %v2052_v8, %v2051_v62  ;;  %v2054_v14 = vpop.f32.mrb[30].mxu1  ;;  %2173 = vmatprep.mubr.bf16.mxu0 %v1142_v7  ;;  %v1965_v27 = vadd.f32 %v1964_v16, %v1963_v24  ;;  %v1966_v29 = vpop.f32.mrb[30].mxu0 }
 0x134   : > { %v2055_v18 = vpop.f32.mrb[31].mxu1  ;;  %v1967_v32 = vpop.f32.mrb[31].mxu0 }
 0x135   : > { %v1038_v20 = vadd.f32 %v2053_v13, %v1941_v22  ;;  %v2056_v21 = vadd.f32 %v2055_v18, %v2054_v14  ;;  %v1968_v34 = vadd.f32 %v1967_v32, %v1966_v29 }
 0x137   : > { %v1041_v23 = vadd.f32 %v2056_v21, %v1944_v28 }
 0x139   : > { %v2057_v10 = vpop.f32.mrb[32].mxu1  ;;  %v1143_v25 = vpack.c.bf16 %v1041_v23, %v1038_v20  ;;  %v1969_v39 = vpop.f32.mrb[32].mxu0 }
 0x13a   : > { %v2058_v26 = vpop.f32.mrb[33].mxu1  ;;  %v1970_v28 = vpop.f32.mrb[33].mxu0 }
 0x13b   : > { %v2059_v30 = vadd.f32 %v2058_v26, %v2057_v10  ;;  %v2060_v31 = vpop.f32.mrb[34].mxu1  ;;  %2174 = vmatmul.mubr.bf16.gmra.mrb[52].mxu0 %v1143_v25  ;;  %v1971_v43 = vadd.f32 %v1970_v28, %v1969_v39  ;;  %v1972_v46 = vpop.f32.mrb[34].mxu0 }
 0x13c   : > { %v2061_v33 = vpop.f32.mrb[35].mxu1  ;;  %v1973_v49 = vpop.f32.mrb[35].mxu0 }
 0x13d   : > { %v1046_v35 = vadd.f32 %v2059_v30, %v1947_v37  ;;  %v2062_v36 = vadd.f32 %v2061_v33, %v2060_v31  ;;  %v1974_v51 = vadd.f32 %v1973_v49, %v1972_v46 }
 0x13f   : > { %v1049_v38 = vadd.f32 %v2062_v36, %v1950_v44 }
 0x141   : > { %v2063_v22 = vpop.f32.mrb[36].mxu1  ;;  %v1144_v40 = vpack.c.bf16 %v1049_v38, %v1046_v35  ;;  %v1975_v58 = vpop.f32.mrb[36].mxu0 }
 0x142   : > { %v2064_v41 = vpop.f32.mrb[37].mxu1  ;;  %v1976_v44 = vpop.f32.mrb[37].mxu0 }
 0x143   : > { %v2065_v47 = vadd.f32 %v2064_v41, %v2063_v22  ;;  %v2066_v48 = vpop.f32.mrb[38].mxu1  ;;  %2177 = vmatprep.mubr.bf16.mxu0 %v1144_v40  ;;  %v1977_v61 = vadd.f32 %v1976_v44, %v1975_v58  ;;  %v1978_v1 = vpop.f32.mrb[38].mxu0 }
 0x144   : > { %v2067_v50 = vpop.f32.mrb[39].mxu1  ;;  %v1979_v6 = vpop.f32.mrb[39].mxu0 }
 0x145   : > { %v1054_v53 = vadd.f32 %v2065_v47, %v1953_v55  ;;  %v2068_v54 = vadd.f32 %v2067_v50, %v2066_v48  ;;  %v1980_v7 = vadd.f32 %v1979_v6, %v1978_v1 }
 0x147   : > { %v1057_v56 = vadd.f32 %v2068_v54, %v1956_v63 }
 0x149   : > { %v2069_v37 = vpop.f32.mrb[40].mxu1  ;;  %v1145_v59 = vpack.c.bf16 %v1057_v56, %v1054_v53  ;;  %v1981_v13 = vpop.f32.mrb[40].mxu0 }
 0x14a   : > { %v2070_v60 = vpop.f32.mrb[41].mxu1  ;;  %v1982_v63 = vpop.f32.mrb[41].mxu0 }
 0x14b   : > { %v2071_v2 = vadd.f32 %v2070_v60, %v2069_v37  ;;  %v2072_v3 = vpop.f32.mrb[42].mxu1  ;;  %2178 = vmatmul.mubr.bf16.gmra.mrb[56].mxu0 %v1145_v59  ;;  %v1983_v18 = vadd.f32 %v1982_v63, %v1981_v13  ;;  %v1984_v20 = vpop.f32.mrb[42].mxu0 }
 0x14c   : > { %v2073_v62 = vpop.f32.mrb[43].mxu1  ;;  %v1985_v24 = vpop.f32.mrb[43].mxu0 }
 0x14d   : > { %v1062_v4 = vadd.f32 %v2071_v2, %v1959_v9  ;;  %v2074_v8 = vadd.f32 %v2073_v62, %v2072_v3  ;;  %v1986_v25 = vadd.f32 %v1985_v24, %v1984_v20 }
 0x14f   : > { %v1065_v11 = vadd.f32 %v2074_v8, %v1962_v19 }
 0x151   : > { %v2075_v55 = vpop.f32.mrb[44].mxu1  ;;  %v1146_v14 = vpack.c.bf16 %v1065_v11, %v1062_v4  ;;  %v1987_v30 = vpop.f32.mrb[44].mxu0 }
 0x152   : > { %v2076_v15 = vpop.f32.mrb[45].mxu1  ;;  %v1988_v19 = vpop.f32.mrb[45].mxu0 }
 0x153   : > { %v2077_v21 = vadd.f32 %v2076_v15, %v2075_v55  ;;  %v2078_v23 = vpop.f32.mrb[46].mxu1  ;;  %2181 = vmatprep.mubr.bf16.mxu0 %v1146_v14  ;;  %v1989_v33 = vadd.f32 %v1988_v19, %v1987_v30  ;;  %v1990_v35 = vpop.f32.mrb[46].mxu0 }
 0x154   : > { %v2079_v10 = vpop.f32.mrb[47].mxu1  ;;  %v1991_v39 = vpop.f32.mrb[47].mxu0 }
 0x155   : > { %v1070_v16 = vadd.f32 %v2077_v21, %v1965_v27  ;;  %v2080_v26 = vadd.f32 %v2079_v10, %v2078_v23  ;;  %v1992_v40 = vadd.f32 %v1991_v39, %v1990_v35 }
 0x157   : > { %v1073_v29 = vadd.f32 %v2080_v26, %v1968_v34 }
 0x159   : > { %v2081_v9 = vpop.f32.mrb[48].mxu1  ;;  %v1147_v31 = vpack.c.bf16 %v1073_v29, %v1070_v16 }
 0x15a   : > { %v2082_v32 = vpop.f32.mrb[49].mxu1 }
 0x15b   : > { %v2083_v36 = vadd.f32 %v2082_v32, %v2081_v9  ;;  %v2084_v38 = vpop.f32.mrb[50].mxu1  ;;  %2182 = vmatmul.mubr.bf16.gmra.mrb[60].mxu0 %v1147_v31 }
 0x15c   : > { %v2085_v22 = vpop.f32.mrb[51].mxu1 }
 0x15d   : > { %v1078_v28 = vadd.f32 %v2083_v36, %v1971_v43  ;;  %v2086_v41 = vadd.f32 %v2085_v22, %v2084_v38 }
 0x15f   : > { %v1081_v46 = vadd.f32 %v2086_v41, %v1974_v51 }
 0x161   : > { %v2087_v47 = vpop.f32.mrb[52].mxu1  ;;  %v1148_v27 = vpack.c.bf16 %v1081_v46, %v1078_v28 }
 0x162   : > { %v2088_v48 = vpop.f32.mrb[53].mxu1 }
 0x163   : > { %v2089_v34 = vadd.f32 %v2088_v48, %v2087_v47  ;;  %v2090_v49 = vpop.f32.mrb[54].mxu1  ;;  %2185 = vmatprep.mubr.bf16.mxu0 %v1148_v27 }
 0x164   : > { %v2091_v50 = vpop.f32.mrb[55].mxu1 }
 0x165   : > { %v1086_v53 = vadd.f32 %v2089_v34, %v1977_v61  ;;  %v2092_v54 = vadd.f32 %v2091_v50, %v2090_v49 }
 0x167   : > { %v1089_v56 = vadd.f32 %v2092_v54, %v1980_v7 }
 0x169   : > { %v2093_v58 = vpop.f32.mrb[56].mxu1  ;;  %v1149_v37 = vpack.c.bf16 %v1089_v56, %v1086_v53 }
 0x16a   : > { %v2094_v59 = vpop.f32.mrb[57].mxu1 }
 0x16b   : > { %v2095_v44 = vadd.f32 %v2094_v59, %v2093_v58  ;;  %v2096_v60 = vpop.f32.mrb[58].mxu1  ;;  %2186 = vmatmul.mubr.bf16.gmra.mrb[64].mxu0 %v1149_v37 }
 0x16c   : > { %v2097_v1 = vpop.f32.mrb[59].mxu1 }
 0x16d   : > { %v1094_v43 = vadd.f32 %v2095_v44, %v1983_v18  ;;  %v2098_v2 = vadd.f32 %v2097_v1, %v2096_v60 }
 0x16f   : > { %v1097_v51 = vadd.f32 %v2098_v2, %v1986_v25 }
 0x171   : > { %v2099_v3 = vpop.f32.mrb[60].mxu1  ;;  %v1150_v6 = vpack.c.bf16 %v1097_v51, %v1094_v43 }
 0x172   : > { %v2100_v62 = vpop.f32.mrb[61].mxu1 }
 0x173   : > { %v2101_v4 = vadd.f32 %v2100_v62, %v2099_v3  ;;  %v2102_v8 = vpop.f32.mrb[62].mxu1  ;;  %2189 = vmatprep.mubr.bf16.mxu0 %v1150_v6 }
 0x174   : > { %v2103_v11 = vpop.f32.mrb[63].mxu1 }
 0x175   : > { %v1102_v61 = vadd.f32 %v2101_v4, %v1989_v33  ;;  %v2104_v13 = vadd.f32 %v2103_v11, %v2102_v8 }
 0x177   : > { %v1105_v7 = vadd.f32 %v2104_v13, %v1992_v40 }
 0x179   : > { %v2105_v55 = vpop.f32.mrb[64].mxu1  ;;  %v1151_v14 = vpack.c.bf16 %v1105_v7, %v1102_v61 }
 0x17a   : > { %v2106_v63 = vpop.f32.mrb[65].mxu1 }
 0x17b   : > { %v2107_v15 = vadd.f32 %v2106_v63, %v2105_v55  ;;  %v2108_v20 = vpop.f32.mrb[66].mxu1  ;;  %2190 = vmatmul.mubr.bf16.gmra.mrb[68].mxu0 %v1151_v14 }
 0x17c   : > { %v2109_v21 = vpop.f32.mrb[67].mxu1 }
 0x17d   : > { %v1110_v18 = vadd.f32 %v2107_v15, %v2589_v42  ;;  %v2110_v23 = vadd.f32 %v2109_v21, %v2108_v20 }
 0x17f   : > { %v1113_v24 = vadd.f32 %v2110_v23, %v2591_v45 }
 0x181   : > { %v2111_v10 = vpop.f32.mrb[68].mxu1  ;;  %v1152_v25 = vpack.c.bf16 %v1113_v24, %v1110_v18 }
 0x182   : > { %v2112_v16 = vpop.f32.mrb[69].mxu1 }
 0x183   : > { %v2113_v26 = vadd.f32 %v2112_v16, %v2111_v10  ;;  %v2114_v29 = vpop.f32.mrb[70].mxu1  ;;  %2193 = vmatprep.mubr.bf16.mxu0 %v1152_v25 }
 0x184   : > { %v2115_v30 = vpop.f32.mrb[71].mxu1 }
 0x185   : > { %v1118_v9 = vadd.f32 %v2113_v26, %v2593_v52  ;;  %v2116_v31 = vadd.f32 %v2115_v30, %v2114_v29 }
 0x187   : > { %v1121_v19 = vadd.f32 %v2116_v31, %v2595_v57 }
 0x189   : > { %v2117_v32 = vpop.f32.mrb[72].mxu1  ;;  %v1153_v33 = vpack.c.bf16 %v1121_v19, %v1118_v9 }
 0x18a   : > { %v2118_v35 = vpop.f32.mrb[73].mxu1 }
 0x18b   : > { %v2119_v36 = vadd.f32 %v2118_v35, %v2117_v32  ;;  %v2120_v42 = vpop.f32.mrb[74].mxu1  ;;  %2194 = vmatmul.mubr.bf16.gmra.mrb[72].mxu0 %v1153_v33 }
 0x18c   : > { %v2121_v38 = vpop.f32.mrb[75].mxu1 }
 0x18d   : > { %v1126_v45 = vadd.f32 %v2119_v36, %v2597_v0  ;;  %v2122_v39 = vadd.f32 %v2121_v38, %v2120_v42 }
 0x18f   : > { %v1129_v22 = vadd.f32 %v2122_v39, %v2599_v5 }
 0x191   : > { %v2123_v40 = vpop.f32.mrb[76].mxu1  ;;  %v1154_v28 = vpack.c.bf16 %v1129_v22, %v1126_v45 }
 0x192   : > { %v2124_v41 = vpop.f32.mrb[77].mxu1 }
 0x193   : > { %v2125_v52 = vadd.f32 %v2124_v41, %v2123_v40  ;;  %v2126_v46 = vpop.f32.mrb[78].mxu1  ;;  %2197 = vmatprep.mubr.bf16.mxu0 %v1154_v28 }
 0x194   : > { %v2127_v57 = vpop.f32.mrb[79].mxu1 }
 0x195   : > { %v1134_v47 = vadd.f32 %v2125_v52, %v2601_v12  ;;  %v2128_v27 = vadd.f32 %v2127_v57, %v2126_v46 }
 0x197   : > { %v1137_v48 = vadd.f32 %v2128_v27, %v2603_v17 }
 0x199   : > { %v1155_v34 = vpack.c.bf16 %v1137_v48, %v1134_v47 }
 0x19b   : > { %2198 = vmatmul.mubr.bf16.gmra.mrb[76].mxu0 %v1155_v34 }
 0x1fe   : > { %v2171_v49 = vpop.f32.mrb[48].mxu0 }
 0x1ff   : > { %v1254_v0 = vpop.f32.mrb[49].mxu0  ;;  %v1383_v53 = vmax.f32 %v2171_v49, 0.0 }
 0x200   : > { %v2172_v50 = vpop.f32.mrb[50].mxu0  ;;  %v1381_v56 = vmax.f32 %v1254_v0, 0.0 }
 0x201   : > { %v1384_v5 = vmax.f32 %v2172_v50, 0.0  ;;  %v1257_v54 = vpop.f32.mrb[51].mxu0 }
 0x202   : > { %v1382_v12 = vmax.f32 %v1257_v54, 0.0 }
 0x203   : > { %v1818_v17 = vpack.c.bf16 %v1384_v5, %v1383_v53 }
 0x204   : > { %v1813_v58 = vpack.c.bf16 %v1382_v12, %v1381_v56 }
 0x205   : > { %1890 = vst [vmem:[%s2617_s28 + $0x8] sm:$0xff] %v1818_v17  }
 0x206   : > { %1814 = vst [vmem:[%s2617_s28] sm:$0xff] %v1813_v58  }
 0x20e   : > { %v2175_v37 = vpop.f32.mrb[52].mxu0 }
 0x20f   : > { %v1270_v59 = vpop.f32.mrb[53].mxu0  ;;  %v1387_v60 = vmax.f32 %v2175_v37, 0.0 }
 0x210   : > { %v2176_v44 = vpop.f32.mrb[54].mxu0  ;;  %v1385_v2 = vmax.f32 %v1270_v59, 0.0 }
 0x211   : > { %v1388_v1 = vmax.f32 %v2176_v44, 0.0  ;;  %v1273_v43 = vpop.f32.mrb[55].mxu0 }
 0x212   : > { %v1386_v51 = vmax.f32 %v1273_v43, 0.0 }
 0x213   : > { %v1828_v3 = vpack.c.bf16 %v1388_v1, %v1387_v60 }
 0x214   : > { %v1823_v6 = vpack.c.bf16 %v1386_v51, %v1385_v2 }
 0x215   : > { %1892 = vst [vmem:[%s2617_s28 + $0x18] sm:$0xff] %v1828_v3  }
 0x216   : > { %1891 = vst [vmem:[%s2617_s28 + $0x10] sm:$0xff] %v1823_v6  }
 0x21e   : > { %v2179_v62 = vpop.f32.mrb[56].mxu0 }
 0x21f   : > { %v1286_v4 = vpop.f32.mrb[57].mxu0  ;;  %v1391_v11 = vmax.f32 %v2179_v62, 0.0 }
 0x220   : > { %v2180_v8 = vpop.f32.mrb[58].mxu0  ;;  %v1389_v7 = vmax.f32 %v1286_v4, 0.0 }
 0x221   : > { %v1392_v61 = vmax.f32 %v2180_v8, 0.0  ;;  %v1289_v13 = vpop.f32.mrb[59].mxu0 }
 0x222   : > { %v1390_v55 = vmax.f32 %v1289_v13, 0.0 }
 0x223   : > { %v1838_v14 = vpack.c.bf16 %v1392_v61, %v1391_v11 }
 0x224   : > { %v1833_v63 = vpack.c.bf16 %v1390_v55, %v1389_v7 }
 0x225   : > { %1894 = vst [vmem:[%s2617_s28 + $0x28] sm:$0xff] %v1838_v14  }
 0x226   : > { %1893 = vst [vmem:[%s2617_s28 + $0x20] sm:$0xff] %v1833_v63  }
 0x22e   : > { %v2183_v15 = vpop.f32.mrb[60].mxu0 }
 0x22f   : > { %v1302_v20 = vpop.f32.mrb[61].mxu0  ;;  %v1395_v18 = vmax.f32 %v2183_v15, 0.0 }
 0x230   : > { %v2184_v21 = vpop.f32.mrb[62].mxu0  ;;  %v1393_v10 = vmax.f32 %v1302_v20, 0.0 }
 0x231   : > { %v1396_v23 = vmax.f32 %v2184_v21, 0.0  ;;  %v1305_v24 = vpop.f32.mrb[63].mxu0 }
 0x232   : > { %v1394_v25 = vmax.f32 %v1305_v24, 0.0 }
 0x233   : > { %v1848_v16 = vpack.c.bf16 %v1396_v23, %v1395_v18 }
 0x234   : > { %v1843_v26 = vpack.c.bf16 %v1394_v25, %v1393_v10 }
 0x235   : > { %1896 = vst [vmem:[%s2617_s28 + $0x38] sm:$0xff] %v1848_v16  }
 0x236   : > { %1895 = vst [vmem:[%s2617_s28 + $0x30] sm:$0xff] %v1843_v26  }
 0x23e   : > { %v2187_v29 = vpop.f32.mrb[64].mxu0 }
 0x23f   : > { %v1318_v30 = vpop.f32.mrb[65].mxu0  ;;  %v1399_v31 = vmax.f32 %v2187_v29, 0.0 }
 0x240   : > { %v2188_v9 = vpop.f32.mrb[66].mxu0  ;;  %v1397_v33 = vmax.f32 %v1318_v30, 0.0 }
 0x241   : > { %v1400_v19 = vmax.f32 %v2188_v9, 0.0  ;;  %v1321_v32 = vpop.f32.mrb[67].mxu0 }
 0x242   : > { %v1398_v35 = vmax.f32 %v1321_v32, 0.0 }
 0x243   : > { %v1858_v36 = vpack.c.bf16 %v1400_v19, %v1399_v31 }
 0x244   : > { %v1853_v42 = vpack.c.bf16 %v1398_v35, %v1397_v33 }
 0x245   : > { %1898 = vst [vmem:[%s2617_s28 + $0x48] sm:$0xff] %v1858_v36  }
 0x246   : > { %1897 = vst [vmem:[%s2617_s28 + $0x40] sm:$0xff] %v1853_v42  }
 0x24e   : > { %v2191_v38 = vpop.f32.mrb[68].mxu0 }
 0x24f   : > { %v1334_v45 = vpop.f32.mrb[69].mxu0  ;;  %v1403_v22 = vmax.f32 %v2191_v38, 0.0 }
 0x250   : > { %v2192_v39 = vpop.f32.mrb[70].mxu0  ;;  %v1401_v41 = vmax.f32 %v1334_v45, 0.0 }
 0x251   : > { %v1404_v40 = vmax.f32 %v2192_v39, 0.0  ;;  %v1337_v28 = vpop.f32.mrb[71].mxu0 }
 0x252   : > { %v1402_v52 = vmax.f32 %v1337_v28, 0.0 }
 0x253   : > { %v1868_v46 = vpack.c.bf16 %v1404_v40, %v1403_v22 }
 0x254   : > { %v1863_v57 = vpack.c.bf16 %v1402_v52, %v1401_v41 }
 0x255   : > { %1900 = vst [vmem:[%s2617_s28 + $0x58] sm:$0xff] %v1868_v46  }
 0x256   : > { %1899 = vst [vmem:[%s2617_s28 + $0x50] sm:$0xff] %v1863_v57  }
 0x25e   : > { %v2195_v47 = vpop.f32.mrb[72].mxu0 }
 0x25f   : > { %v1350_v27 = vpop.f32.mrb[73].mxu0  ;;  %v1407_v34 = vmax.f32 %v2195_v47, 0.0 }
 0x260   : > { %v2196_v48 = vpop.f32.mrb[74].mxu0  ;;  %v1405_v50 = vmax.f32 %v1350_v27, 0.0 }
 0x261   : > { %v1408_v49 = vmax.f32 %v2196_v48, 0.0  ;;  %v1353_v0 = vpop.f32.mrb[75].mxu0 }
 0x262   : > { %v1406_v53 = vmax.f32 %v1353_v0, 0.0 }
 0x263   : > { %v1878_v5 = vpack.c.bf16 %v1408_v49, %v1407_v34 }
 0x264   : > { %v1873_v54 = vpack.c.bf16 %v1406_v53, %v1405_v50 }
 0x265   : > { %1902 = vst [vmem:[%s2617_s28 + $0x68] sm:$0xff] %v1878_v5  }
 0x266   : > { %1901 = vst [vmem:[%s2617_s28 + $0x60] sm:$0xff] %v1873_v54  }
 0x26e   : > { %v2199_v56 = vpop.f32.mrb[76].mxu0 }
 0x26f   : > { %v1366_v12 = vpop.f32.mrb[77].mxu0  ;;  %v1411_v58 = vmax.f32 %v2199_v56, 0.0 }
 0x270   : > { %v2200_v17 = vpop.f32.mrb[78].mxu0  ;;  %v1409_v44 = vmax.f32 %v1366_v12, 0.0 }
 0x271   : > { %v1412_v37 = vmax.f32 %v2200_v17, 0.0  ;;  %v1369_v59 = vpop.f32.mrb[79].mxu0 }
 0x272   : > { %v1410_v60 = vmax.f32 %v1369_v59, 0.0 }
 0x273   : > { %v1888_v1 = vpack.c.bf16 %v1412_v37, %v1411_v58 }
 0x274   : > { %v1883_v43 = vpack.c.bf16 %v1410_v60, %v1409_v44 }
 0x275   : > { %1904 = vst [vmem:[%s2617_s28 + $0x78] sm:$0xff] %v1888_v1  }
 0x276   : > { %1903 = vst [vmem:[%s2617_s28 + $0x70] sm:$0xff] %v1883_v43  }
 0x277 PF: > { %s13_s12 = sadd.s32 1, %s2367_s12  }
 0x278   : > { %p10_p4 = scmp.ge.s32.totalorder %s13_s12, 4  }
 0x27a   :  { %12 = sbr.rel (!%p10_p4) target bundleno = 1 (0x1), region = 62 }

// kernel: gcn_e_forward.7
= control target key start
LH: loop header
LB: loop body
LE: loop exit
PB: predicated region body
PF: predicated region fallthrough
CT: control target
= control target key end

     0   :  { %s2070_s12 = smov 0   ;;  %s2335_s0 = inlined_call_operand.vmem [shape: bf16[512,512], index: 0, kind: input, shape index: {}]   ;;  %s2336_s1 = inlined_call_operand.vmem [shape: bf16[512,128], index: 1, kind: input, shape index: {}]   ;;  %s2337_s2 = inlined_call_operand.vmem [shape: bf16[128,128], index: 2, kind: input, shape index: {}]   ;;  %s2338_s3 = inlined_call_operand.vmem [shape: f32[512,128], index: 3, kind: output, shape index: {}]  }
   0x1 LB: > { %s1469_s13 = sadd.s32 4294967295, %s2048_s12   ;;  %p1473_p0 = scmp.ge.s32.totalorder %s2048_s12, 1  ;;  %s2048_s12 = sphi %s2070_s12, %s13_s12  }
   0x2   : > { %p139_p1 = scmp.lt.s32.totalorder %s2048_s12, 3 }
   0x4   : > { %p140_p2 = pnand %p1473_p0, %p139_p1 }
   0x5   : > { %v1906_v0 = vld [vmem:[%s2336_s1 + $0x40] sm:$0xff] (!%p140_p2)   ;;  %s1474_s16 = sshll.u32 (!%p140_p2), %s1469_s13, 5  ;;  %v1908_v2 = vld [vmem:[%s2336_s1 + $0x48] sm:$0xff] (!%p140_p2)   ;;  %v1910_v4 = vld [vmem:[%s2336_s1 + $0x50] sm:$0xff] (!%p140_p2)  }
   0x6   : > { %143 = sbr.rel (%p140_p2) target bundleno = 627 (0x273), region = 32  ;;  %v1907_v1 = vld [vmem:[%s2336_s1] sm:$0xff] (!%p140_p2)   ;;  %1882 = vmatprep.subr.bf16.mxu1 (!%p140_p2), %v1906_v0  ;;  %1586 = vmatprep.subr.bf16.mxu0 (!%p140_p2), %v1906_v0  ;;  %v1909_v3 = vld [vmem:[%s2336_s1 + $0x8] sm:$0xff] (!%p140_p2)   ;;  %p165_p3 = scmp.lt.s32.totalorder (!%p140_p2), %s1474_s16, 63  ;;  %v1911_v5 = vld [vmem:[%s2336_s1 + $0x10] sm:$0xff] (!%p140_p2)  }
   0x7   : > { %1890 = vmatpush3.bf16.msra.mxu1 (!%p140_p2), %v1907_v1  ;;  %1587 = vmatpush3.bf16.msra.mxu0 (!%p140_p2), %v1907_v1  ;;  %v1912_v6 = vld [vmem:[%s2336_s1 + $0x58] sm:$0xff] (!%p140_p2)   ;;  %v1914_v8 = vld [vmem:[%s2336_s1 + $0x60] sm:$0xff] (!%p140_p2)   ;;  %v1916_v10 = vld [vmem:[%s2336_s1 + $0x68] sm:$0xff] (!%p140_p2)  }
   0x8   : > { %1883 = vmatprep.subr.bf16.mxu1 (!%p140_p2), %v1908_v2  ;;  %1588 = vmatprep.subr.bf16.mxu0 (!%p140_p2), %v1908_v2  ;;  %v1913_v7 = vld [vmem:[%s2336_s1 + $0x18] sm:$0xff] (!%p140_p2)   ;;  %v1915_v9 = vld [vmem:[%s2336_s1 + $0x20] sm:$0xff] (!%p140_p2)   ;;  %v1917_v12 = vld [vmem:[%s2336_s1 + $0x28] sm:$0xff] (!%p140_p2)  }
   0x9   : > { %v1918_v13 = vld [vmem:[%s2336_s1 + $0x70] sm:$0xff] (!%p140_p2)   ;;  %v1920_v15 = vld [vmem:[%s2336_s1 + $0x78] sm:$0xff] (!%p140_p2)   ;;  %v1925_v17 = vld [vmem:[%s2336_s1 + $0xc0] sm:$0xff] (!%p140_p2)  }
   0xa   : > { %v1919_v14 = vld [vmem:[%s2336_s1 + $0x30] sm:$0xff] (!%p140_p2)   ;;  %v1921_v16 = vld [vmem:[%s2336_s1 + $0x38] sm:$0xff] (!%p140_p2)   ;;  %v1926_v19 = vld [vmem:[%s2336_s1 + $0x80] sm:$0xff] (!%p140_p2)  }
   0xb   : > { %1891 = vmatpush3.bf16.msra.mxu1 (!%p140_p2), %v1909_v3  ;;  %1589 = vmatpush3.bf16.msra.mxu0 (!%p140_p2), %v1909_v3  ;;  %v1927_v21 = vld [vmem:[%s2336_s1 + $0xc8] sm:$0xff] (!%p140_p2)   ;;  %v1932_v24 = vld [vmem:[%s2336_s1 + $0xd0] sm:$0xff] (!%p140_p2)   ;;  %v1934_v28 = vld [vmem:[%s2336_s1 + $0xd8] sm:$0xff] (!%p140_p2)  }
   0xc   : > { %1884 = vmatprep.subr.bf16.mxu1 (!%p140_p2), %v1910_v4  ;;  %1590 = vmatprep.subr.bf16.mxu0 (!%p140_p2), %v1910_v4  ;;  %v1928_v22 = vld [vmem:[%s2336_s1 + $0x88] sm:$0xff] (!%p140_p2)   ;;  %v1933_v25 = vld [vmem:[%s2336_s1 + $0x90] sm:$0xff] (!%p140_p2)   ;;  %v1935_v31 = vld [vmem:[%s2336_s1 + $0x98] sm:$0xff] (!%p140_p2)  }
   0xd   : > { %s2340_s16 = smov (!%p165_p3, %s1474_s16), 63  ;;  %v1939_v33 = vld [vmem:[%s2336_s1 + $0xe0] sm:$0xff]   ;;  %v1941_v38 = vld [vmem:[%s2336_s1 + $0xe8] sm:$0xff]   ;;  %v1946_v41 = vld [vmem:[%s2336_s1 + $0xf0] sm:$0xff]  }
   0xe   : > { %s1585_s4 = sshll.u32 %s2340_s16, 4  ;;  %v1940_v36 = vld [vmem:[%s2336_s1 + $0xa0] sm:$0xff]   ;;  %v1942_v39 = vld [vmem:[%s2336_s1 + $0xa8] sm:$0xff]   ;;  %v1947_v44 = vld [vmem:[%s2336_s1 + $0xb0] sm:$0xff]  }
   0xf   : > { %1892 = vmatpush3.bf16.msra.mxu1 %v1911_v5  ;;  %1591 = vmatpush3.bf16.msra.mxu0 %v1911_v5  ;;  %s2111_s9 = scalar_lea.vmem %s2335_s0, %s1585_s4  ;;  %v1948_v46 = vld [vmem:[%s2336_s1 + $0xf8] sm:$0xff]  }
  0x10   : > { %1885 = vmatprep.subr.bf16.mxu1 %v1912_v6  ;;  %1592 = vmatprep.subr.bf16.mxu0 %v1912_v6  ;;  %v1924_v11 = vld [vmem:[%s2111_s9 + $0x184] ss:$16 sps:$4 sm:$0xff]   ;;  %v1922_v18 = vld [vmem:[%s2111_s9 + $0x180] ss:$16 sps:$4 sm:$0xff]   ;;  %v1955_v45 = vld [vmem:[%s2111_s9 + $0xc] ss:$16 sps:$4 sm:$0xff]  }
  0x11   : > { %946 = vmatprep.mubr.bf16.mxu1 %v1924_v11  ;;  %v1929_v20 = vld [vmem:[%s2111_s9 + $0x1a4] ss:$16 sps:$4 sm:$0xff]   ;;  %v1931_v23 = vld [vmem:[%s2111_s9 + $0x1a0] ss:$16 sps:$4 sm:$0xff]   ;;  %v1949_v47 = vld [vmem:[%s2336_s1 + $0xb8] sm:$0xff]  }
  0x12   : > { %v1950_v26 = vld [vmem:[%s2111_s9] ss:$16 sps:$4 sm:$0xff]   ;;  %v1952_v27 = vld [vmem:[%s2111_s9 + $0x4] ss:$16 sps:$4 sm:$0xff]   ;;  %v1953_v48 = vld [vmem:[%s2111_s9 + $0x8] ss:$16 sps:$4 sm:$0xff]  }
  0x13   : > { %1893 = vmatpush3.bf16.msra.mxu1 %v1913_v7  ;;  %1593 = vmatpush3.bf16.msra.mxu0 %v1913_v7  ;;  %v1936_v29 = vld [vmem:[%s2111_s9 + $0x1c4] ss:$16 sps:$4 sm:$0xff]   ;;  %v1938_v32 = vld [vmem:[%s2111_s9 + $0x1c0] ss:$16 sps:$4 sm:$0xff]   ;;  %v1958_v51 = vld [vmem:[%s2111_s9 + $0x2c] ss:$16 sps:$4 sm:$0xff]  }
  0x14   : > { %1886 = vmatprep.subr.bf16.mxu1 %v1914_v8  ;;  %1594 = vmatprep.subr.bf16.mxu0 %v1914_v8  ;;  %v1956_v30 = vld [vmem:[%s2111_s9 + $0x24] ss:$16 sps:$4 sm:$0xff]   ;;  %v1960_v34 = vld [vmem:[%s2111_s9 + $0x20] ss:$16 sps:$4 sm:$0xff]   ;;  %v1961_v53 = vld [vmem:[%s2111_s9 + $0x28] ss:$16 sps:$4 sm:$0xff]  }
  0x15   : > { %850 = vmatprep.mubr.bf16.mxu0 %v1952_v27  ;;  %v1962_v35 = vld [vmem:[%s2111_s9 + $0x44] ss:$16 sps:$4 sm:$0xff]   ;;  %v1945_v40 = vld [vmem:[%s2111_s9 + $0x1e0] ss:$16 sps:$4 sm:$0xff]   ;;  %v1964_v55 = vld [vmem:[%s2111_s9 + $0x4c] ss:$16 sps:$4 sm:$0xff]  }
  0x16   : > { %v1943_v37 = vld [vmem:[%s2111_s9 + $0x1e4] ss:$16 sps:$4 sm:$0xff]   ;;  %v1966_v42 = vld [vmem:[%s2111_s9 + $0x40] ss:$16 sps:$4 sm:$0xff]   ;;  %v1967_v57 = vld [vmem:[%s2111_s9 + $0x48] ss:$16 sps:$4 sm:$0xff]  }
  0x17   : > { %1894 = vmatpush3.bf16.msra.mxu1 %v1915_v9  ;;  %1595 = vmatpush3.bf16.msra.mxu0 %v1915_v9  ;;  %v1968_v43 = vld [vmem:[%s2111_s9 + $0x64] ss:$16 sps:$4 sm:$0xff]   ;;  %v1972_v49 = vld [vmem:[%s2111_s9 + $0x60] ss:$16 sps:$4 sm:$0xff]   ;;  %v1970_v59 = vld [vmem:[%s2111_s9 + $0x6c] ss:$16 sps:$4 sm:$0xff]  }
  0x18   : > { %1887 = vmatprep.subr.bf16.mxu1 %v1916_v10  ;;  %1596 = vmatprep.subr.bf16.mxu0 %v1916_v10  ;;  %v1974_v50 = vld [vmem:[%s2111_s9 + $0x84] ss:$16 sps:$4 sm:$0xff]   ;;  %v1978_v52 = vld [vmem:[%s2111_s9 + $0x80] ss:$16 sps:$4 sm:$0xff]   ;;  %v1973_v61 = vld [vmem:[%s2111_s9 + $0x68] ss:$16 sps:$4 sm:$0xff]  }
  0x19   : > { %v1980_v54 = vld [vmem:[%s2111_s9 + $0xa4] ss:$16 sps:$4 sm:$0xff]   ;;  %v1984_v56 = vld [vmem:[%s2111_s9 + $0xa0] ss:$16 sps:$4 sm:$0xff]   ;;  %v1976_v63 = vld [vmem:[%s2111_s9 + $0x8c] ss:$16 sps:$4 sm:$0xff]  }
  0x1a   : > { %v1986_v58 = vld [vmem:[%s2111_s9 + $0xc4] ss:$16 sps:$4 sm:$0xff]   ;;  %v1990_v60 = vld [vmem:[%s2111_s9 + $0xc0] ss:$16 sps:$4 sm:$0xff]   ;;  %v1979_v1 = vld [vmem:[%s2111_s9 + $0x88] ss:$16 sps:$4 sm:$0xff]  }
  0x1b   : > { %1895 = vmatpush3.bf16.msra.mxu1 %v1917_v12  ;;  %1597 = vmatpush3.bf16.msra.mxu0 %v1917_v12  ;;  %v1992_v62 = vld [vmem:[%s2111_s9 + $0xe4] ss:$16 sps:$4 sm:$0xff]   ;;  %v1996_v0 = vld [vmem:[%s2111_s9 + $0xe0] ss:$16 sps:$4 sm:$0xff]   ;;  %v1982_v3 = vld [vmem:[%s2111_s9 + $0xac] ss:$16 sps:$4 sm:$0xff]  }
  0x1c   : > { %1888 = vmatprep.subr.bf16.mxu1 %v1918_v13  ;;  %1598 = vmatprep.subr.bf16.mxu0 %v1918_v13  ;;  %v1998_v2 = vld [vmem:[%s2111_s9 + $0x104] ss:$16 sps:$4 sm:$0xff]   ;;  %v2002_v4 = vld [vmem:[%s2111_s9 + $0x100] ss:$16 sps:$4 sm:$0xff]   ;;  %v1985_v5 = vld [vmem:[%s2111_s9 + $0xa8] ss:$16 sps:$4 sm:$0xff]  }
  0x1d   : > { %v2004_v6 = vld [vmem:[%s2111_s9 + $0x124] ss:$16 sps:$4 sm:$0xff]   ;;  %v1988_v7 = vld [vmem:[%s2111_s9 + $0xcc] ss:$16 sps:$4 sm:$0xff]   ;;  %v2008_v8 = vld [vmem:[%s2111_s9 + $0x120] ss:$16 sps:$4 sm:$0xff]  }
  0x1e   : > { %v1991_v9 = vld [vmem:[%s2111_s9 + $0xc8] ss:$16 sps:$4 sm:$0xff]   ;;  %v2010_v10 = vld [vmem:[%s2111_s9 + $0x144] ss:$16 sps:$4 sm:$0xff]   ;;  %v1994_v11 = vld [vmem:[%s2111_s9 + $0xec] ss:$16 sps:$4 sm:$0xff]  }
  0x1f   : > { %1896 = vmatpush3.bf16.msra.mxu1 %v1919_v14  ;;  %1599 = vmatpush3.bf16.msra.mxu0 %v1919_v14  ;;  %v2014_v12 = vld [vmem:[%s2111_s9 + $0x140] ss:$16 sps:$4 sm:$0xff]   ;;  %v1997_v13 = vld [vmem:[%s2111_s9 + $0xe8] ss:$16 sps:$4 sm:$0xff]   ;;  %v2016_v14 = vld [vmem:[%s2111_s9 + $0x164] ss:$16 sps:$4 sm:$0xff]  }
  0x20   : > { %1889 = vmatprep.subr.bf16.mxu1 %v1920_v15  ;;  %1600 = vmatprep.subr.bf16.mxu0 %v1920_v15  ;;  %v2000_v15 = vld [vmem:[%s2111_s9 + $0x10c] ss:$16 sps:$4 sm:$0xff]   ;;  %v2038_v27 = vld [vmem:[%s2337_s2 + $0x20] sm:$0xff]  }
  0x23   : > { %1897 = vmatpush3.bf16.msra.mxu1 %v1921_v16  ;;  %1601 = vmatpush3.bf16.msra.mxu0 %v1921_v16  ;;  %v2020_v16 = vld [vmem:[%s2111_s9 + $0x160] ss:$16 sps:$4 sm:$0xff]  }
  0x24   : > { %1698 = vmatprep.subr.bf16.mxu1 %v1925_v17  ;;  %v2003_v17 = vld [vmem:[%s2111_s9 + $0x108] ss:$16 sps:$4 sm:$0xff]  }
  0x26   : > { %947 = vmatmul.mubr.bf16.vlgmr.msra.gmra.mrb[0].mxu1 %v1922_v18  ;;  %851 = vmatmul.mubr.bf16.vlgmr.msra.gmra.mrb[0].mxu0 %v1950_v26  ;;  %v2006_v18 = vld [vmem:[%s2111_s9 + $0x12c] ss:$16 sps:$4 sm:$0xff]  }
  0x27   : > { %1699 = vmatpush3.bf16.msra.mxu1 %v1926_v19  ;;  %954 = vmatprep.mubr.bf16.mxu1 %v1929_v20  ;;  %v2034_v19 = vld [vmem:[%s2337_s2] sm:$0xff]   ;;  %v2009_v20 = vld [vmem:[%s2111_s9 + $0x128] ss:$16 sps:$4 sm:$0xff]  }
  0x28   : > { %1700 = vmatprep.subr.bf16.mxu1 %v1927_v21  ;;  %858 = vmatprep.mubr.bf16.mxu0 %v1956_v30  ;;  %v2012_v21 = vld [vmem:[%s2111_s9 + $0x14c] ss:$16 sps:$4 sm:$0xff]  }
  0x29   : > { %1834 = vmatprep.subr.bf16.mxu0 %v2034_v19  ;;  %v2037_v26 = vld [vmem:[%s2337_s2 + $0x18] sm:$0xff]   ;;  %v2039_v30 = vld [vmem:[%s2337_s2 + $0x28] sm:$0xff]  }
  0x2a   : > { %1835 = vmatpush3.bf16.msra.mxu0 %v2034_v19 }
  0x2b   : > { %1701 = vmatpush3.bf16.msra.mxu1 %v1928_v22  ;;  %v2035_v22 = vld [vmem:[%s2337_s2 + $0x8] sm:$0xff]  }
  0x2c   : > { %1702 = vmatprep.subr.bf16.mxu1 %v1932_v24  ;;  %1836 = vmatprep.subr.bf16.mxu0 %v2035_v22  ;;  %v2015_v24 = vld [vmem:[%s2111_s9 + $0x148] ss:$16 sps:$4 sm:$0xff]  }
  0x2e   : > { %955 = vmatmul.mubr.bf16.gmra.mrb[4].mxu1 %v1931_v23  ;;  %859 = vmatmul.mubr.bf16.gmra.mrb[4].mxu0 %v1960_v34  ;;  %v2036_v23 = vld [vmem:[%s2337_s2 + $0x10] sm:$0xff]   ;;  %v2041_v34 = vld [vmem:[%s2337_s2 + $0x38] sm:$0xff]  }
  0x2f   : > { %1703 = vmatpush3.bf16.msra.mxu1 %v1933_v25  ;;  %962 = vmatprep.mubr.bf16.mxu1 %v1936_v29  ;;  %v2018_v25 = vld [vmem:[%s2111_s9 + $0x16c] ss:$16 sps:$4 sm:$0xff]  }
  0x30   : > { %1704 = vmatprep.subr.bf16.mxu1 %v1934_v28  ;;  %866 = vmatprep.mubr.bf16.mxu0 %v1962_v35  ;;  %v2021_v28 = vld [vmem:[%s2111_s9 + $0x168] ss:$16 sps:$4 sm:$0xff]   ;;  %v2022_v29 = vld [vmem:[%s2111_s9 + $0x18c] ss:$16 sps:$4 sm:$0xff]  }
  0x31   : > { %1837 = vmatpush3.bf16.msra.mxu0 %v2035_v22  ;;  %v2027_v35 = vld [vmem:[%s2111_s9 + $0x1a8] ss:$16 sps:$4 sm:$0xff]  }
  0x32   : > { %1838 = vmatprep.subr.bf16.mxu0 %v2036_v23 }
  0x33   : > { %1705 = vmatpush3.bf16.msra.mxu1 %v1935_v31  ;;  %v2040_v31 = vld [vmem:[%s2337_s2 + $0x30] sm:$0xff]  }
  0x34   : > { %1706 = vmatprep.subr.bf16.mxu1 %v1939_v33  ;;  %v2025_v33 = vld [vmem:[%s2111_s9 + $0x1ac] ss:$16 sps:$4 sm:$0xff]  }
  0x35   : > { %1839 = vmatpush3.bf16.msra.mxu0 %v2036_v23 }
  0x36   : > { %963 = vmatmul.mubr.bf16.gmra.mrb[8].mxu1 %v1938_v32  ;;  %867 = vmatmul.mubr.bf16.gmra.mrb[8].mxu0 %v1966_v42  ;;  %v2024_v32 = vld [vmem:[%s2111_s9 + $0x188] ss:$16 sps:$4 sm:$0xff]  }
  0x37   : > { %1707 = vmatpush3.bf16.msra.mxu1 %v1940_v36  ;;  %970 = vmatprep.mubr.bf16.mxu1 %v1943_v37  ;;  %v2028_v36 = vld [vmem:[%s2111_s9 + $0x1cc] ss:$16 sps:$4 sm:$0xff]   ;;  %v2030_v37 = vld [vmem:[%s2111_s9 + $0x1c8] ss:$16 sps:$4 sm:$0xff]  }
  0x38   : > { %1708 = vmatprep.subr.bf16.mxu1 %v1941_v38  ;;  %874 = vmatprep.mubr.bf16.mxu0 %v1968_v43  ;;  %v2031_v38 = vld [vmem:[%s2111_s9 + $0x1ec] ss:$16 sps:$4 sm:$0xff]  }
  0x39   : > { %1840 = vmatprep.subr.bf16.mxu0 %v2037_v26 }
  0x3a   : > { %1841 = vmatpush3.bf16.msra.mxu0 %v2037_v26 }
  0x3b   : > { %1709 = vmatpush3.bf16.msra.mxu1 %v1942_v39  ;;  %1842 = vmatprep.subr.bf16.mxu0 %v2038_v27  ;;  %v2033_v39 = vld [vmem:[%s2111_s9 + $0x1e8] ss:$16 sps:$4 sm:$0xff]   ;;  %s1478_s9 = sshll.u32 %s2340_s16, 3 }
  0x3c   : > { %1710 = vmatprep.subr.bf16.mxu1 %v1946_v41  ;;  %s2298_s28 = scalar_lea.vmem %s2338_s3, %s1478_s9 }
  0x3e   : > { %971 = vmatmul.mubr.bf16.gmra.mrb[12].mxu1 %v1945_v40  ;;  %875 = vmatmul.mubr.bf16.gmra.mrb[12].mxu0 %v1972_v49 }
  0x3f   : > { %1711 = vmatpush3.bf16.msra.mxu1 %v1947_v44  ;;  %1011 = vmatprep.mubr.bf16.mxu1 %v1955_v45 }
  0x40   : > { %1712 = vmatprep.subr.bf16.mxu1 %v1948_v46  ;;  %882 = vmatprep.mubr.bf16.mxu0 %v1974_v50 }
  0x41   : > { %1843 = vmatpush3.bf16.msra.mxu0 %v2038_v27 }
  0x42   : > { %1844 = vmatprep.subr.bf16.mxu0 %v2039_v30 }
  0x43   : > { %1713 = vmatpush3.bf16.msra.mxu1 %v1949_v47 }
  0x45   : > { %1845 = vmatpush3.bf16.msra.mxu0 %v2039_v30 }
  0x46   : > { %1012 = vmatmul.mubr.bf16.vlgmr.msra.gmra.mrb[16].mxu1 %v1953_v48  ;;  %883 = vmatmul.mubr.bf16.gmra.mrb[16].mxu0 %v1978_v52 }
  0x47   : > { %1019 = vmatprep.mubr.bf16.mxu1 %v1958_v51  ;;  %890 = vmatprep.mubr.bf16.mxu0 %v1980_v54 }
  0x48   : > { %1846 = vmatprep.subr.bf16.mxu0 %v2040_v31 }
  0x49   : > { %1847 = vmatpush3.bf16.msra.mxu0 %v2040_v31 }
  0x4a   : > { %1848 = vmatprep.subr.bf16.mxu0 %v2041_v34 }
  0x4d   : > { %1849 = vmatpush3.bf16.msra.mxu0 %v2041_v34 }
  0x4e   : > { %1020 = vmatmul.mubr.bf16.gmra.mrb[20].mxu1 %v1961_v53  ;;  %891 = vmatmul.mubr.bf16.gmra.mrb[20].mxu0 %v1984_v56 }
  0x4f   : > { %1027 = vmatprep.mubr.bf16.mxu1 %v1964_v55  ;;  %898 = vmatprep.mubr.bf16.mxu0 %v1986_v58 }
  0x56   : > { %1028 = vmatmul.mubr.bf16.gmra.mrb[24].mxu1 %v1967_v57  ;;  %899 = vmatmul.mubr.bf16.gmra.mrb[24].mxu0 %v1990_v60 }
  0x57   : > { %1035 = vmatprep.mubr.bf16.mxu1 %v1970_v59  ;;  %906 = vmatprep.mubr.bf16.mxu0 %v1992_v62 }
  0x5e   : > { %1036 = vmatmul.mubr.bf16.gmra.mrb[28].mxu1 %v1973_v61  ;;  %907 = vmatmul.mubr.bf16.gmra.mrb[28].mxu0 %v1996_v0 }
  0x5f   : > { %1043 = vmatprep.mubr.bf16.mxu1 %v1976_v63  ;;  %914 = vmatprep.mubr.bf16.mxu0 %v1998_v2 }
  0x66   : > { %1044 = vmatmul.mubr.bf16.gmra.mrb[32].mxu1 %v1979_v1  ;;  %915 = vmatmul.mubr.bf16.gmra.mrb[32].mxu0 %v2002_v4 }
  0x67   : > { %1051 = vmatprep.mubr.bf16.mxu1 %v1982_v3  ;;  %922 = vmatprep.mubr.bf16.mxu0 %v2004_v6 }
  0x6e   : > { %1052 = vmatmul.mubr.bf16.gmra.mrb[36].mxu1 %v1985_v5  ;;  %923 = vmatmul.mubr.bf16.gmra.mrb[36].mxu0 %v2008_v8 }
  0x6f   : > { %1059 = vmatprep.mubr.bf16.mxu1 %v1988_v7  ;;  %930 = vmatprep.mubr.bf16.mxu0 %v2010_v10 }
  0x76   : > { %1060 = vmatmul.mubr.bf16.gmra.mrb[40].mxu1 %v1991_v9  ;;  %931 = vmatmul.mubr.bf16.gmra.mrb[40].mxu0 %v2014_v12 }
  0x77   : > { %1067 = vmatprep.mubr.bf16.mxu1 %v1994_v11  ;;  %938 = vmatprep.mubr.bf16.mxu0 %v2016_v14 }
  0x7e   : > { %1068 = vmatmul.mubr.bf16.gmra.mrb[44].mxu1 %v1997_v13  ;;  %939 = vmatmul.mubr.bf16.gmra.mrb[44].mxu0 %v2020_v16 }
  0x7f   : > { %1075 = vmatprep.mubr.bf16.mxu1 %v2000_v15 }
  0x86   : > { %1076 = vmatmul.mubr.bf16.gmra.mrb[48].mxu1 %v2003_v17 }
  0x87   : > { %1083 = vmatprep.mubr.bf16.mxu1 %v2006_v18 }
  0x8e   : > { %1084 = vmatmul.mubr.bf16.gmra.mrb[52].mxu1 %v2009_v20 }
  0x8f   : > { %1091 = vmatprep.mubr.bf16.mxu1 %v2012_v21 }
  0x96   : > { %1092 = vmatmul.mubr.bf16.gmra.mrb[56].mxu1 %v2015_v24 }
  0x97   : > { %1099 = vmatprep.mubr.bf16.mxu1 %v2018_v25 }
  0x9e   : > { %1100 = vmatmul.mubr.bf16.gmra.mrb[60].mxu1 %v2021_v28 }
  0x9f   : > { %1107 = vmatprep.mubr.bf16.mxu1 %v2022_v29 }
  0xa6   : > { %1108 = vmatmul.mubr.bf16.gmra.mrb[64].mxu1 %v2024_v32 }
  0xa7   : > { %1115 = vmatprep.mubr.bf16.mxu1 %v2025_v33 }
  0xae   : > { %1116 = vmatmul.mubr.bf16.gmra.mrb[68].mxu1 %v2027_v35 }
  0xaf   : > { %1123 = vmatprep.mubr.bf16.mxu1 %v2028_v36 }
  0xb6   : > { %1124 = vmatmul.mubr.bf16.gmra.mrb[72].mxu1 %v2030_v37 }
  0xb7   : > { %1131 = vmatprep.mubr.bf16.mxu1 %v2031_v38 }
  0xbe   : > { %1132 = vmatmul.mubr.bf16.gmra.mrb[76].mxu1 %v2033_v39 }
  0xf9   : > { %v1674_v40 = vpop.f32.mrb[0].mxu1  ;;  %v1602_v46 = vpop.f32.mrb[0].mxu0 }
  0xfa   : > { %v1675_v41 = vpop.f32.mrb[1].mxu1  ;;  %v1603_v48 = vpop.f32.mrb[1].mxu0 }
  0xfb   : > { %v2270_v42 = vadd.f32 %v1675_v41, %v1674_v40  ;;  %v1677_v43 = vpop.f32.mrb[2].mxu1  ;;  %v1604_v50 = vadd.f32 %v1603_v48, %v1602_v46  ;;  %v1605_v51 = vpop.f32.mrb[2].mxu0 }
  0xfc   : > { %v1678_v44 = vpop.f32.mrb[3].mxu1  ;;  %v1606_v54 = vpop.f32.mrb[3].mxu0 }
  0xfd   : > { %v2272_v45 = vadd.f32 %v1678_v44, %v1677_v43  ;;  %v1607_v56 = vadd.f32 %v1606_v54, %v1605_v51 }
 0x101   : > { %v1680_v47 = vpop.f32.mrb[4].mxu1  ;;  %v1608_v58 = vpop.f32.mrb[4].mxu0 }
 0x102   : > { %v1681_v49 = vpop.f32.mrb[5].mxu1  ;;  %v1609_v60 = vpop.f32.mrb[5].mxu0 }
 0x103   : > { %v2274_v52 = vadd.f32 %v1681_v49, %v1680_v47  ;;  %v1683_v53 = vpop.f32.mrb[6].mxu1  ;;  %v1610_v62 = vadd.f32 %v1609_v60, %v1608_v58  ;;  %v1611_v63 = vpop.f32.mrb[6].mxu0 }
 0x104   : > { %v1684_v55 = vpop.f32.mrb[7].mxu1  ;;  %v1612_v2 = vpop.f32.mrb[7].mxu0 }
 0x105   : > { %v2276_v57 = vadd.f32 %v1684_v55, %v1683_v53  ;;  %v1613_v4 = vadd.f32 %v1612_v2, %v1611_v63 }
 0x109   : > { %v1686_v59 = vpop.f32.mrb[8].mxu1  ;;  %v1614_v6 = vpop.f32.mrb[8].mxu0 }
 0x10a   : > { %v1687_v61 = vpop.f32.mrb[9].mxu1  ;;  %v1615_v8 = vpop.f32.mrb[9].mxu0 }
 0x10b   : > { %v2278_v0 = vadd.f32 %v1687_v61, %v1686_v59  ;;  %v1689_v1 = vpop.f32.mrb[10].mxu1  ;;  %v1616_v10 = vadd.f32 %v1615_v8, %v1614_v6  ;;  %v1617_v11 = vpop.f32.mrb[10].mxu0 }
 0x10c   : > { %v1690_v3 = vpop.f32.mrb[11].mxu1  ;;  %v1618_v14 = vpop.f32.mrb[11].mxu0 }
 0x10d   : > { %v2280_v5 = vadd.f32 %v1690_v3, %v1689_v1  ;;  %v1619_v16 = vadd.f32 %v1618_v14, %v1617_v11 }
 0x111   : > { %v1692_v7 = vpop.f32.mrb[12].mxu1  ;;  %v1620_v18 = vpop.f32.mrb[12].mxu0 }
 0x112   : > { %v1693_v9 = vpop.f32.mrb[13].mxu1  ;;  %v1621_v20 = vpop.f32.mrb[13].mxu0 }
 0x113   : > { %v2282_v12 = vadd.f32 %v1693_v9, %v1692_v7  ;;  %v1695_v13 = vpop.f32.mrb[14].mxu1  ;;  %v1622_v22 = vadd.f32 %v1621_v20, %v1620_v18  ;;  %v1623_v23 = vpop.f32.mrb[14].mxu0 }
 0x114   : > { %v1696_v15 = vpop.f32.mrb[15].mxu1  ;;  %v1624_v26 = vpop.f32.mrb[15].mxu0 }
 0x115   : > { %v2284_v17 = vadd.f32 %v1696_v15, %v1695_v13  ;;  %v1625_v28 = vadd.f32 %v1624_v26, %v1623_v23 }
 0x119   : > { %v1714_v19 = vpop.f32.mrb[16].mxu1  ;;  %v1626_v32 = vpop.f32.mrb[16].mxu0 }
 0x11a   : > { %v1715_v21 = vpop.f32.mrb[17].mxu1  ;;  %v1627_v35 = vpop.f32.mrb[17].mxu0 }
 0x11b   : > { %v1716_v24 = vadd.f32 %v1715_v21, %v1714_v19  ;;  %v1717_v25 = vpop.f32.mrb[18].mxu1  ;;  %v1628_v37 = vadd.f32 %v1627_v35, %v1626_v32  ;;  %v1629_v38 = vpop.f32.mrb[18].mxu0 }
 0x11c   : > { %v1718_v27 = vpop.f32.mrb[19].mxu1  ;;  %v1630_v41 = vpop.f32.mrb[19].mxu0 }
 0x11d   : > { %v1014_v29 = vadd.f32 %v1716_v24, %v1604_v50  ;;  %v1719_v30 = vadd.f32 %v1718_v27, %v1717_v25  ;;  %v1631_v44 = vadd.f32 %v1630_v41, %v1629_v38 }
 0x11f   : > { %v1017_v31 = vadd.f32 %v1719_v30, %v1607_v56 }
 0x121   : > { %v1720_v33 = vpop.f32.mrb[20].mxu1  ;;  %v1140_v34 = vpack.c.bf16 %v1017_v31, %v1014_v29  ;;  %v1632_v49 = vpop.f32.mrb[20].mxu0 }
 0x122   : > { %v1721_v36 = vpop.f32.mrb[21].mxu1  ;;  %v1633_v53 = vpop.f32.mrb[21].mxu0 }
 0x123   : > { %v1722_v39 = vadd.f32 %v1721_v36, %v1720_v33  ;;  %v1723_v40 = vpop.f32.mrb[22].mxu1  ;;  %1850 = vmatprep.mubr.bf16.mxu0 %v1140_v34  ;;  %v1634_v55 = vadd.f32 %v1633_v53, %v1632_v49  ;;  %v1635_v56 = vpop.f32.mrb[22].mxu0 }
 0x124   : > { %v1724_v43 = vpop.f32.mrb[23].mxu1  ;;  %v1636_v60 = vpop.f32.mrb[23].mxu0 }
 0x125   : > { %v1022_v46 = vadd.f32 %v1722_v39, %v1610_v62  ;;  %v1725_v47 = vadd.f32 %v1724_v43, %v1723_v40  ;;  %v1637_v63 = vadd.f32 %v1636_v60, %v1635_v56 }
 0x127   : > { %v1025_v48 = vadd.f32 %v1725_v47, %v1613_v4 }
 0x129   : > { %v1141_v50 = vpack.c.bf16 %v1025_v48, %v1022_v46  ;;  %v1726_v51 = vpop.f32.mrb[24].mxu1  ;;  %v1638_v6 = vpop.f32.mrb[24].mxu0 }
 0x12a   : > { %v1727_v54 = vpop.f32.mrb[25].mxu1  ;;  %v1639_v4 = vpop.f32.mrb[25].mxu0 }
 0x12b   : > { %v1728_v58 = vadd.f32 %v1727_v54, %v1726_v51  ;;  %v1729_v59 = vpop.f32.mrb[26].mxu1  ;;  %1851 = vmatmul.mubr.bf16.vlgmr.msra.gmra.mrb[48].mxu0 %v1141_v50  ;;  %v1640_v9 = vadd.f32 %v1639_v4, %v1638_v6  ;;  %v1641_v11 = vpop.f32.mrb[26].mxu0 }
 0x12c   : > { %v1730_v61 = vpop.f32.mrb[27].mxu1  ;;  %v1642_v15 = vpop.f32.mrb[27].mxu0 }
 0x12d   : > { %v1030_v1 = vadd.f32 %v1728_v58, %v1616_v10  ;;  %v1731_v2 = vadd.f32 %v1730_v61, %v1729_v59  ;;  %v1643_v19 = vadd.f32 %v1642_v15, %v1641_v11 }
 0x12f   : > { %v1033_v3 = vadd.f32 %v1731_v2, %v1619_v16 }
 0x131   : > { %v1732_v62 = vpop.f32.mrb[28].mxu1  ;;  %v1142_v7 = vpack.c.bf16 %v1033_v3, %v1030_v1  ;;  %v1644_v24 = vpop.f32.mrb[28].mxu0 }
 0x132   : > { %v1733_v8 = vpop.f32.mrb[29].mxu1  ;;  %v1645_v16 = vpop.f32.mrb[29].mxu0 }
 0x133   : > { %v1734_v13 = vadd.f32 %v1733_v8, %v1732_v62  ;;  %v1735_v14 = vpop.f32.mrb[30].mxu1  ;;  %1854 = vmatprep.mubr.bf16.mxu0 %v1142_v7  ;;  %v1646_v27 = vadd.f32 %v1645_v16, %v1644_v24  ;;  %v1647_v29 = vpop.f32.mrb[30].mxu0 }
 0x134   : > { %v1736_v18 = vpop.f32.mrb[31].mxu1  ;;  %v1648_v32 = vpop.f32.mrb[31].mxu0 }
 0x135   : > { %v1038_v20 = vadd.f32 %v1734_v13, %v1622_v22  ;;  %v1737_v21 = vadd.f32 %v1736_v18, %v1735_v14  ;;  %v1649_v34 = vadd.f32 %v1648_v32, %v1647_v29 }
 0x137   : > { %v1041_v23 = vadd.f32 %v1737_v21, %v1625_v28 }
 0x139   : > { %v1738_v10 = vpop.f32.mrb[32].mxu1  ;;  %v1143_v25 = vpack.c.bf16 %v1041_v23, %v1038_v20  ;;  %v1650_v39 = vpop.f32.mrb[32].mxu0 }
 0x13a   : > { %v1739_v26 = vpop.f32.mrb[33].mxu1  ;;  %v1651_v28 = vpop.f32.mrb[33].mxu0 }
 0x13b   : > { %v1740_v30 = vadd.f32 %v1739_v26, %v1738_v10  ;;  %v1741_v31 = vpop.f32.mrb[34].mxu1  ;;  %1855 = vmatmul.mubr.bf16.gmra.mrb[52].mxu0 %v1143_v25  ;;  %v1652_v43 = vadd.f32 %v1651_v28, %v1650_v39  ;;  %v1653_v46 = vpop.f32.mrb[34].mxu0 }
 0x13c   : > { %v1742_v33 = vpop.f32.mrb[35].mxu1  ;;  %v1654_v49 = vpop.f32.mrb[35].mxu0 }
 0x13d   : > { %v1046_v35 = vadd.f32 %v1740_v30, %v1628_v37  ;;  %v1743_v36 = vadd.f32 %v1742_v33, %v1741_v31  ;;  %v1655_v51 = vadd.f32 %v1654_v49, %v1653_v46 }
 0x13f   : > { %v1049_v38 = vadd.f32 %v1743_v36, %v1631_v44 }
 0x141   : > { %v1744_v22 = vpop.f32.mrb[36].mxu1  ;;  %v1144_v40 = vpack.c.bf16 %v1049_v38, %v1046_v35  ;;  %v1656_v58 = vpop.f32.mrb[36].mxu0 }
 0x142   : > { %v1745_v41 = vpop.f32.mrb[37].mxu1  ;;  %v1657_v44 = vpop.f32.mrb[37].mxu0 }
 0x143   : > { %v1746_v47 = vadd.f32 %v1745_v41, %v1744_v22  ;;  %v1747_v48 = vpop.f32.mrb[38].mxu1  ;;  %1858 = vmatprep.mubr.bf16.mxu0 %v1144_v40  ;;  %v1658_v61 = vadd.f32 %v1657_v44, %v1656_v58  ;;  %v1659_v1 = vpop.f32.mrb[38].mxu0 }
 0x144   : > { %v1748_v50 = vpop.f32.mrb[39].mxu1  ;;  %v1660_v6 = vpop.f32.mrb[39].mxu0 }
 0x145   : > { %v1054_v53 = vadd.f32 %v1746_v47, %v1634_v55  ;;  %v1749_v54 = vadd.f32 %v1748_v50, %v1747_v48  ;;  %v1661_v7 = vadd.f32 %v1660_v6, %v1659_v1 }
 0x147   : > { %v1057_v56 = vadd.f32 %v1749_v54, %v1637_v63 }
 0x149   : > { %v1750_v37 = vpop.f32.mrb[40].mxu1  ;;  %v1145_v59 = vpack.c.bf16 %v1057_v56, %v1054_v53  ;;  %v1662_v13 = vpop.f32.mrb[40].mxu0 }
 0x14a   : > { %v1751_v60 = vpop.f32.mrb[41].mxu1  ;;  %v1663_v63 = vpop.f32.mrb[41].mxu0 }
 0x14b   : > { %v1752_v2 = vadd.f32 %v1751_v60, %v1750_v37  ;;  %v1753_v3 = vpop.f32.mrb[42].mxu1  ;;  %1859 = vmatmul.mubr.bf16.gmra.mrb[56].mxu0 %v1145_v59  ;;  %v1664_v18 = vadd.f32 %v1663_v63, %v1662_v13  ;;  %v1665_v20 = vpop.f32.mrb[42].mxu0 }
 0x14c   : > { %v1754_v62 = vpop.f32.mrb[43].mxu1  ;;  %v1666_v24 = vpop.f32.mrb[43].mxu0 }
 0x14d   : > { %v1062_v4 = vadd.f32 %v1752_v2, %v1640_v9  ;;  %v1755_v8 = vadd.f32 %v1754_v62, %v1753_v3  ;;  %v1667_v25 = vadd.f32 %v1666_v24, %v1665_v20 }
 0x14f   : > { %v1065_v11 = vadd.f32 %v1755_v8, %v1643_v19 }
 0x151   : > { %v1756_v55 = vpop.f32.mrb[44].mxu1  ;;  %v1146_v14 = vpack.c.bf16 %v1065_v11, %v1062_v4  ;;  %v1668_v30 = vpop.f32.mrb[44].mxu0 }
 0x152   : > { %v1757_v15 = vpop.f32.mrb[45].mxu1  ;;  %v1669_v19 = vpop.f32.mrb[45].mxu0 }
 0x153   : > { %v1758_v21 = vadd.f32 %v1757_v15, %v1756_v55  ;;  %v1759_v23 = vpop.f32.mrb[46].mxu1  ;;  %1862 = vmatprep.mubr.bf16.mxu0 %v1146_v14  ;;  %v1670_v33 = vadd.f32 %v1669_v19, %v1668_v30  ;;  %v1671_v35 = vpop.f32.mrb[46].mxu0 }
 0x154   : > { %v1760_v10 = vpop.f32.mrb[47].mxu1  ;;  %v1672_v39 = vpop.f32.mrb[47].mxu0 }
 0x155   : > { %v1070_v16 = vadd.f32 %v1758_v21, %v1646_v27  ;;  %v1761_v26 = vadd.f32 %v1760_v10, %v1759_v23  ;;  %v1673_v40 = vadd.f32 %v1672_v39, %v1671_v35 }
 0x157   : > { %v1073_v29 = vadd.f32 %v1761_v26, %v1649_v34 }
 0x159   : > { %v1762_v9 = vpop.f32.mrb[48].mxu1  ;;  %v1147_v31 = vpack.c.bf16 %v1073_v29, %v1070_v16 }
 0x15a   : > { %v1763_v32 = vpop.f32.mrb[49].mxu1 }
 0x15b   : > { %v1764_v36 = vadd.f32 %v1763_v32, %v1762_v9  ;;  %v1765_v38 = vpop.f32.mrb[50].mxu1  ;;  %1863 = vmatmul.mubr.bf16.gmra.mrb[60].mxu0 %v1147_v31 }
 0x15c   : > { %v1766_v22 = vpop.f32.mrb[51].mxu1 }
 0x15d   : > { %v1078_v28 = vadd.f32 %v1764_v36, %v1652_v43  ;;  %v1767_v41 = vadd.f32 %v1766_v22, %v1765_v38 }
 0x15f   : > { %v1081_v46 = vadd.f32 %v1767_v41, %v1655_v51 }
 0x161   : > { %v1768_v47 = vpop.f32.mrb[52].mxu1  ;;  %v1148_v27 = vpack.c.bf16 %v1081_v46, %v1078_v28 }
 0x162   : > { %v1769_v48 = vpop.f32.mrb[53].mxu1 }
 0x163   : > { %v1770_v34 = vadd.f32 %v1769_v48, %v1768_v47  ;;  %v1771_v49 = vpop.f32.mrb[54].mxu1  ;;  %1866 = vmatprep.mubr.bf16.mxu0 %v1148_v27 }
 0x164   : > { %v1772_v50 = vpop.f32.mrb[55].mxu1 }
 0x165   : > { %v1086_v53 = vadd.f32 %v1770_v34, %v1658_v61  ;;  %v1773_v54 = vadd.f32 %v1772_v50, %v1771_v49 }
 0x167   : > { %v1089_v56 = vadd.f32 %v1773_v54, %v1661_v7 }
 0x169   : > { %v1774_v58 = vpop.f32.mrb[56].mxu1  ;;  %v1149_v37 = vpack.c.bf16 %v1089_v56, %v1086_v53 }
 0x16a   : > { %v1775_v59 = vpop.f32.mrb[57].mxu1 }
 0x16b   : > { %v1776_v44 = vadd.f32 %v1775_v59, %v1774_v58  ;;  %v1777_v60 = vpop.f32.mrb[58].mxu1  ;;  %1867 = vmatmul.mubr.bf16.gmra.mrb[64].mxu0 %v1149_v37 }
 0x16c   : > { %v1778_v1 = vpop.f32.mrb[59].mxu1 }
 0x16d   : > { %v1094_v43 = vadd.f32 %v1776_v44, %v1664_v18  ;;  %v1779_v2 = vadd.f32 %v1778_v1, %v1777_v60 }
 0x16f   : > { %v1097_v51 = vadd.f32 %v1779_v2, %v1667_v25 }
 0x171   : > { %v1780_v3 = vpop.f32.mrb[60].mxu1  ;;  %v1150_v6 = vpack.c.bf16 %v1097_v51, %v1094_v43 }
 0x172   : > { %v1781_v62 = vpop.f32.mrb[61].mxu1 }
 0x173   : > { %v1782_v4 = vadd.f32 %v1781_v62, %v1780_v3  ;;  %v1783_v8 = vpop.f32.mrb[62].mxu1  ;;  %1870 = vmatprep.mubr.bf16.mxu0 %v1150_v6 }
 0x174   : > { %v1784_v11 = vpop.f32.mrb[63].mxu1 }
 0x175   : > { %v1102_v61 = vadd.f32 %v1782_v4, %v1670_v33  ;;  %v1785_v13 = vadd.f32 %v1784_v11, %v1783_v8 }
 0x177   : > { %v1105_v7 = vadd.f32 %v1785_v13, %v1673_v40 }
 0x179   : > { %v1786_v55 = vpop.f32.mrb[64].mxu1  ;;  %v1151_v14 = vpack.c.bf16 %v1105_v7, %v1102_v61 }
 0x17a   : > { %v1787_v63 = vpop.f32.mrb[65].mxu1 }
 0x17b   : > { %v1788_v15 = vadd.f32 %v1787_v63, %v1786_v55  ;;  %v1789_v20 = vpop.f32.mrb[66].mxu1  ;;  %1871 = vmatmul.mubr.bf16.gmra.mrb[68].mxu0 %v1151_v14 }
 0x17c   : > { %v1790_v21 = vpop.f32.mrb[67].mxu1 }
 0x17d   : > { %v1110_v18 = vadd.f32 %v1788_v15, %v2270_v42  ;;  %v1791_v23 = vadd.f32 %v1790_v21, %v1789_v20 }
 0x17f   : > { %v1113_v24 = vadd.f32 %v1791_v23, %v2272_v45 }
 0x181   : > { %v1792_v10 = vpop.f32.mrb[68].mxu1  ;;  %v1152_v25 = vpack.c.bf16 %v1113_v24, %v1110_v18 }
 0x182   : > { %v1793_v16 = vpop.f32.mrb[69].mxu1 }
 0x183   : > { %v1794_v26 = vadd.f32 %v1793_v16, %v1792_v10  ;;  %v1795_v29 = vpop.f32.mrb[70].mxu1  ;;  %1874 = vmatprep.mubr.bf16.mxu0 %v1152_v25 }
 0x184   : > { %v1796_v30 = vpop.f32.mrb[71].mxu1 }
 0x185   : > { %v1118_v9 = vadd.f32 %v1794_v26, %v2274_v52  ;;  %v1797_v31 = vadd.f32 %v1796_v30, %v1795_v29 }
 0x187   : > { %v1121_v19 = vadd.f32 %v1797_v31, %v2276_v57 }
 0x189   : > { %v1798_v32 = vpop.f32.mrb[72].mxu1  ;;  %v1153_v33 = vpack.c.bf16 %v1121_v19, %v1118_v9 }
 0x18a   : > { %v1799_v35 = vpop.f32.mrb[73].mxu1 }
 0x18b   : > { %v1800_v36 = vadd.f32 %v1799_v35, %v1798_v32  ;;  %v1801_v42 = vpop.f32.mrb[74].mxu1  ;;  %1875 = vmatmul.mubr.bf16.gmra.mrb[72].mxu0 %v1153_v33 }
 0x18c   : > { %v1802_v38 = vpop.f32.mrb[75].mxu1 }
 0x18d   : > { %v1126_v45 = vadd.f32 %v1800_v36, %v2278_v0  ;;  %v1803_v39 = vadd.f32 %v1802_v38, %v1801_v42 }
 0x18f   : > { %v1129_v22 = vadd.f32 %v1803_v39, %v2280_v5 }
 0x191   : > { %v1804_v40 = vpop.f32.mrb[76].mxu1  ;;  %v1154_v28 = vpack.c.bf16 %v1129_v22, %v1126_v45 }
 0x192   : > { %v1805_v41 = vpop.f32.mrb[77].mxu1 }
 0x193   : > { %v1806_v52 = vadd.f32 %v1805_v41, %v1804_v40  ;;  %v1807_v46 = vpop.f32.mrb[78].mxu1  ;;  %1878 = vmatprep.mubr.bf16.mxu0 %v1154_v28 }
 0x194   : > { %v1808_v57 = vpop.f32.mrb[79].mxu1 }
 0x195   : > { %v1134_v47 = vadd.f32 %v1806_v52, %v2282_v12  ;;  %v1809_v27 = vadd.f32 %v1808_v57, %v1807_v46 }
 0x197   : > { %v1137_v48 = vadd.f32 %v1809_v27, %v2284_v17 }
 0x199   : > { %v1155_v34 = vpack.c.bf16 %v1137_v48, %v1134_v47 }
 0x19b   : > { %1879 = vmatmul.mubr.bf16.gmra.mrb[76].mxu0 %v1155_v34 }
 0x1fe   : > { %v1852_v0 = vpop.f32.mrb[48].mxu0 }
 0x1ff   : > { %1383 = vst [vmem:[%s2298_s28 + $0x10] sm:$0xff] %v1852_v0  ;;  %v1254_v5 = vpop.f32.mrb[49].mxu0 }
 0x200   : > { %1381 = vst [vmem:[%s2298_s28] sm:$0xff] %v1254_v5  ;;  %v1853_v12 = vpop.f32.mrb[50].mxu0 }
 0x201   : > { %1384 = vst [vmem:[%s2298_s28 + $0x18] sm:$0xff] %v1853_v12  ;;  %v1257_v17 = vpop.f32.mrb[51].mxu0 }
 0x202   : > { %1382 = vst [vmem:[%s2298_s28 + $0x8] sm:$0xff] %v1257_v17 }
 0x20e   : > { %v1856_v49 = vpop.f32.mrb[52].mxu0 }
 0x20f   : > { %1387 = vst [vmem:[%s2298_s28 + $0x30] sm:$0xff] %v1856_v49  ;;  %v1270_v50 = vpop.f32.mrb[53].mxu0 }
 0x210   : > { %1385 = vst [vmem:[%s2298_s28 + $0x20] sm:$0xff] %v1270_v50  ;;  %v1857_v53 = vpop.f32.mrb[54].mxu0 }
 0x211   : > { %1388 = vst [vmem:[%s2298_s28 + $0x38] sm:$0xff] %v1857_v53  ;;  %v1273_v54 = vpop.f32.mrb[55].mxu0 }
 0x212   : > { %1386 = vst [vmem:[%s2298_s28 + $0x28] sm:$0xff] %v1273_v54 }
 0x21e   : > { %v1860_v56 = vpop.f32.mrb[56].mxu0 }
 0x21f   : > { %1391 = vst [vmem:[%s2298_s28 + $0x50] sm:$0xff] %v1860_v56  ;;  %v1286_v58 = vpop.f32.mrb[57].mxu0 }
 0x220   : > { %1389 = vst [vmem:[%s2298_s28 + $0x40] sm:$0xff] %v1286_v58  ;;  %v1861_v37 = vpop.f32.mrb[58].mxu0 }
 0x221   : > { %1392 = vst [vmem:[%s2298_s28 + $0x58] sm:$0xff] %v1861_v37  ;;  %v1289_v59 = vpop.f32.mrb[59].mxu0 }
 0x222   : > { %1390 = vst [vmem:[%s2298_s28 + $0x48] sm:$0xff] %v1289_v59 }
 0x22e   : > { %v1864_v44 = vpop.f32.mrb[60].mxu0 }
 0x22f   : > { %1395 = vst [vmem:[%s2298_s28 + $0x70] sm:$0xff] %v1864_v44  ;;  %v1302_v60 = vpop.f32.mrb[61].mxu0 }
 0x230   : > { %1393 = vst [vmem:[%s2298_s28 + $0x60] sm:$0xff] %v1302_v60  ;;  %v1865_v1 = vpop.f32.mrb[62].mxu0 }
 0x231   : > { %1396 = vst [vmem:[%s2298_s28 + $0x78] sm:$0xff] %v1865_v1  ;;  %v1305_v43 = vpop.f32.mrb[63].mxu0 }
 0x232   : > { %1394 = vst [vmem:[%s2298_s28 + $0x68] sm:$0xff] %v1305_v43 }
 0x23e   : > { %v1868_v2 = vpop.f32.mrb[64].mxu0 }
 0x23f   : > { %1399 = vst [vmem:[%s2298_s28 + $0x90] sm:$0xff] %v1868_v2  ;;  %v1318_v51 = vpop.f32.mrb[65].mxu0 }
 0x240   : > { %1397 = vst [vmem:[%s2298_s28 + $0x80] sm:$0xff] %v1318_v51  ;;  %v1869_v3 = vpop.f32.mrb[66].mxu0 }
 0x241   : > { %1400 = vst [vmem:[%s2298_s28 + $0x98] sm:$0xff] %v1869_v3  ;;  %v1321_v6 = vpop.f32.mrb[67].mxu0 }
 0x242   : > { %1398 = vst [vmem:[%s2298_s28 + $0x88] sm:$0xff] %v1321_v6 }
 0x24e   : > { %v1872_v62 = vpop.f32.mrb[68].mxu0 }
 0x24f   : > { %1403 = vst [vmem:[%s2298_s28 + $0xb0] sm:$0xff] %v1872_v62  ;;  %v1334_v4 = vpop.f32.mrb[69].mxu0 }
 0x250   : > { %1401 = vst [vmem:[%s2298_s28 + $0xa0] sm:$0xff] %v1334_v4  ;;  %v1873_v8 = vpop.f32.mrb[70].mxu0 }
 0x251   : > { %1404 = vst [vmem:[%s2298_s28 + $0xb8] sm:$0xff] %v1873_v8  ;;  %v1337_v11 = vpop.f32.mrb[71].mxu0 }
 0x252   : > { %1402 = vst [vmem:[%s2298_s28 + $0xa8] sm:$0xff] %v1337_v11 }
 0x25e   : > { %v1876_v61 = vpop.f32.mrb[72].mxu0 }
 0x25f   : > { %1407 = vst [vmem:[%s2298_s28 + $0xd0] sm:$0xff] %v1876_v61  ;;  %v1350_v13 = vpop.f32.mrb[73].mxu0 }
 0x260   : > { %1405 = vst [vmem:[%s2298_s28 + $0xc0] sm:$0xff] %v1350_v13  ;;  %v1877_v7 = vpop.f32.mrb[74].mxu0 }
 0x261   : > { %1408 = vst [vmem:[%s2298_s28 + $0xd8] sm:$0xff] %v1877_v7  ;;  %v1353_v55 = vpop.f32.mrb[75].mxu0 }
 0x262   : > { %1406 = vst [vmem:[%s2298_s28 + $0xc8] sm:$0xff] %v1353_v55 }
 0x26e   : > { %v1880_v14 = vpop.f32.mrb[76].mxu0 }
 0x26f   : > { %1411 = vst [vmem:[%s2298_s28 + $0xf0] sm:$0xff] %v1880_v14  ;;  %v1366_v63 = vpop.f32.mrb[77].mxu0 }
 0x270   : > { %1409 = vst [vmem:[%s2298_s28 + $0xe0] sm:$0xff] %v1366_v63  ;;  %v1881_v15 = vpop.f32.mrb[78].mxu0 }
 0x271   : > { %1412 = vst [vmem:[%s2298_s28 + $0xf8] sm:$0xff] %v1881_v15  ;;  %v1369_v20 = vpop.f32.mrb[79].mxu0 }
 0x272   : > { %1410 = vst [vmem:[%s2298_s28 + $0xe8] sm:$0xff] %v1369_v20 }
 0x273 PF: > { %s13_s12 = sadd.s32 1, %s2048_s12  }
 0x274   : > { %p10_p4 = scmp.ge.s32.totalorder %s13_s12, 4  }
 0x276   :  { %12 = sbr.rel (!%p10_p4) target bundleno = 1 (0x1), region = 62 }

</bundles_post_ra>
